<compile_context>
chip_gen: v7x
topology: tpu7x:2x2x1
jax: 0.10.0
libtpu: 0.0.40
codegen_flags: <defaults>
</compile_context>

<pallas_src>
import jax
import jax.numpy as jnp
from jax.experimental import pallas as pl
from jax.experimental.pallas import tpu as pltpu

# ----------------------- configuration (small, synthetic) --------------------
BS = 2                 # batch size
C_IN = 4               # nvars (channels)
D_MODEL = 32           # LSTM input_size == hidden_size ('pl' axis of the module)
NUM_PATCH = 8          # sequence length fed to the LSTM ('pn' axis)
N_CLASSES = 5
GATES = 4 * D_MODEL    # 128 — gate slab width (i, f, g, o), lane-dense
OUT_PAD = 128          # padded head-output width (lane-dense store)
SUB = 8                # sublane padding for the batch dimension (2 -> 8)
K_PROJ = C_IN * D_MODEL  # 128 — folded projection contraction dim

# fused weight-slab row offsets (all multiples of 8 -> zero-cost static views)
ROW_PROJ = 0                                  # (128, 128) folded mean+input proj
ROW_WHH = ROW_PROJ + K_PROJ                   # (32, 128)  recurrent weights
ROW_B = ROW_WHH + D_MODEL                     # (64, 128)  bias replicated per row
ROW_WOUT = ROW_B + NUM_PATCH * SUB            # (32, 128)  head weights (padded)
ROW_BOUT = ROW_WOUT + D_MODEL                 # (8, 128)   head bias (padded/repl.)
SLAB_ROWS = ROW_BOUT + SUB                    # 264 rows x 128 lanes (~132 KiB)


# ------------------------------ Pallas kernel ---------------------------------
def lstm_head_kernel(x_ref, w_ref, out_ref):
    hp = jax.lax.Precision.HIGHEST

    # One weight DMA; static 8-aligned slices into the fused slab.
    w_proj = w_ref[ROW_PROJ:ROW_PROJ + K_PROJ, :]            # (128, 128)
    w_hh = w_ref[ROW_WHH:ROW_WHH + D_MODEL, :]               # (32, 128)
    b_big = w_ref[ROW_B:ROW_B + NUM_PATCH * SUB, :]          # (64, 128)
    w_out = w_ref[ROW_WOUT:ROW_WOUT + D_MODEL, :]            # (32, 128)
    b_out = w_ref[ROW_BOUT:ROW_BOUT + SUB, :]                # (8, 128)

    # Folded channel-mean + LSTM input projection for ALL (time, padded-batch)
    # rows in a single MXU op:  (T*8, C*D) @ (C*D, 4D)  =  (64,128)@(128,128).
    # Bias is pre-replicated to 64 rows -> plain vreg adds, no broadcast in-loop.
    x_all = x_ref[...].reshape(NUM_PATCH * SUB, K_PROJ)
    xp = jnp.dot(x_all, w_proj, preferred_element_type=jnp.float32,
                 precision=hp) + b_big                        # (64, 128)

    h = jnp.zeros((SUB, D_MODEL), jnp.float32)
    c = jnp.zeros((SUB, D_MODEL), jnp.float32)

    # Short fixed-trip recurrence (NUM_PATCH == 8): static unroll.
    # PyTorch gate order: i, f, g, o.  w_hh / bias are hoisted above.
    for t in range(NUM_PATCH):
        gates = xp[t * SUB:(t + 1) * SUB, :] + jnp.dot(
            h, w_hh, preferred_element_type=jnp.float32, precision=hp)
        sig = jax.nn.sigmoid(gates)          # one lane-dense 128-wide EUP pass
        th = jnp.tanh(gates)                 # one lane-dense 128-wide EUP pass
        i_g = sig[:, 0 * D_MODEL:1 * D_MODEL]
        f_g = sig[:, 1 * D_MODEL:2 * D_MODEL]
        g_g = th[:, 2 * D_MODEL:3 * D_MODEL]
        o_g = sig[:, 3 * D_MODEL:4 * D_MODEL]
        c = f_g * c + i_g * g_g
        h = o_g * jnp.tanh(c)

    # Head: Linear on the final CELL state c_n (matches `_, (_, c_n) = lstm(x)`).
    # Lane-dense padded output; wrapper slices to (BS, n_classes).
    out_ref[...] = jnp.dot(c, w_out, preferred_element_type=jnp.float32,
                           precision=hp) + b_out


# ------------------------------ kernel wrapper --------------------------------
def lstm_head_forward(x, params):
    """x: [bs, nvars, d_model, num_patch] -> logits [bs, n_classes]."""
    # (B, C, D, T) -> time-major (T, B, C*D), zero-pad batch sublanes to 8.
    # (These glue ops fuse into a single XLA fusion under jit.)
    xt = jnp.transpose(x, (3, 0, 1, 2)).reshape(NUM_PATCH, BS, K_PROJ)
    x_pad = jnp.zeros((NUM_PATCH, SUB, K_PROJ), x.dtype).at[:, :BS, :].set(xt)

    y_pad = pl.pallas_call(
        lstm_head_kernel,
        grid=(1,),
        in_specs=[
            pl.BlockSpec((NUM_PATCH, SUB, K_PROJ), lambda i: (0, 0, 0)),
            pl.BlockSpec((SLAB_ROWS, GATES), lambda i: (0, 0)),
        ],
        out_specs=pl.BlockSpec((SUB, OUT_PAD), lambda i: (0, 0)),
        out_shape=jax.ShapeDtypeStruct((SUB, OUT_PAD), jnp.float32),
        compiler_params=pltpu.CompilerParams(
            dimension_semantics=("arbitrary",)),
    )(x_pad, params["slab"])

    return y_pad[:BS, :N_CLASSES]


# ------------------------------ pure-JAX reference ----------------------------
def lstm_head_ref(x, params):
    hp = jax.lax.Precision.HIGHEST
    z = jnp.mean(x, axis=1)                   # (bs, d_model, num_patch)
    z = jnp.transpose(z, (0, 2, 1))           # (bs, num_patch, d_model)
    bs = x.shape[0]
    h = jnp.zeros((bs, D_MODEL), jnp.float32)
    c = jnp.zeros((bs, D_MODEL), jnp.float32)
    for t in range(NUM_PATCH):
        gates = (jnp.dot(z[:, t, :], params["w_ih"], precision=hp)
                 + jnp.dot(h, params["w_hh"], precision=hp) + params["b"])
        i_g = jax.nn.sigmoid(gates[:, 0 * D_MODEL:1 * D_MODEL])
        f_g = jax.nn.sigmoid(gates[:, 1 * D_MODEL:2 * D_MODEL])
        g_g = jnp.tanh(gates[:, 2 * D_MODEL:3 * D_MODEL])
        o_g = jax.nn.sigmoid(gates[:, 3 * D_MODEL:4 * D_MODEL])
        c = f_g * c + i_g * g_g
        h = o_g * jnp.tanh(c)
    return jnp.dot(c, params["w_out"], precision=hp) + params["b_out"]


# ------------------------------ deterministic init ----------------------------
def init_params(key):
    k = jax.random.split(key, 5)
    s = 1.0 / (D_MODEL ** 0.5)
    # stored pre-transposed: gates = x @ w_ih + h @ w_hh + (b_ih + b_hh)
    w_ih = jax.random.uniform(k[0], (D_MODEL, GATES), jnp.float32, -s, s)
    w_hh = jax.random.uniform(k[1], (D_MODEL, GATES), jnp.float32, -s, s)
    b = jax.random.uniform(k[2], (1, GATES), jnp.float32, -s, s)  # b_ih+b_hh folded
    w_out = jax.random.uniform(k[3], (D_MODEL, N_CLASSES), jnp.float32, -s, s)
    b_out = jax.random.uniform(k[4], (1, N_CLASSES), jnp.float32, -s, s)

    # --- fused weight slab for the kernel -------------------------------------
    # folded channel-mean + input projection: (C*D, 4D) = (128, 128)
    w_proj = jnp.tile(w_ih, (C_IN, 1)) * (1.0 / C_IN)
    # bias replicated across all T*8 projected rows -> plain add, no broadcast
    b_big = jnp.tile(b, (NUM_PATCH * SUB, 1))                       # (64, 128)
    # lane-dense zero-padded head weights / bias (bias replicated to 8 rows)
    w_out_pad = jnp.zeros((D_MODEL, OUT_PAD), jnp.float32).at[:, :N_CLASSES].set(w_out)
    b_out_pad = jnp.zeros((SUB, OUT_PAD), jnp.float32).at[:, :N_CLASSES].set(
        jnp.tile(b_out, (SUB, 1)))
    slab = jnp.concatenate([w_proj, w_hh, b_big, w_out_pad, b_out_pad], axis=0)
    assert slab.shape == (SLAB_ROWS, GATES)

    return dict(w_ih=w_ih, w_hh=w_hh, b=b, w_out=w_out, b_out=b_out, slab=slab)


if __name__ == "__main__":
    key = jax.random.PRNGKey(0)
    kx, kp = jax.random.split(key)
    # module input: [bs x nvars x d_model x num_patch]
    x = jax.random.normal(kx, (BS, C_IN, D_MODEL, NUM_PATCH), jnp.float32)
    params = init_params(kp)

    fwd = jax.jit(lstm_head_forward)
    y = jax.block_until_ready(fwd(x, params))
    assert y.shape == (BS, N_CLASSES)

    y_ref = lstm_head_ref(x, params)
    assert jnp.allclose(y, y_ref, atol=1e-3, rtol=1e-3), (y, y_ref)

    print("KERNEL_OK")
</pallas_src>

<mosaic_0001>
module attributes {stable_mosaic.version = 11 : i64} {
  func.func @lstm_head_kernel(%arg0: i32, %arg1: memref<8x8x128xf32, #tpu.memory_space<vmem>>, %arg2: memref<264x128xf32, #tpu.memory_space<vmem>>, %arg3: memref<8x128xf32, #tpu.memory_space<vmem>>) attributes {dimension_semantics = [#tpu.dimension_semantics<arbitrary>], iteration_bounds = array<i64: 1>, scalar_prefetch = 0 : i64, scratch_operands = 0 : i64, tpu.core_type = #tpu.core_type<tc>, window_params = [{pipeline_mode = #tpu.pipeline_mode<synchronous>, transform_indices = @transform_0, window_bounds = array<i64: 8, 8, 128>}, {pipeline_mode = #tpu.pipeline_mode<synchronous>, transform_indices = @transform_1, window_bounds = array<i64: 264, 128>}, {pipeline_mode = #tpu.pipeline_mode<synchronous>, transform_indices = @transform_2, window_bounds = array<i64: 8, 128>}]} {
    %c0 = arith.constant 0 : index
    %c0_0 = arith.constant 0 : index
    %0 = vector.load %arg2[%c0, %c0_0] : memref<264x128xf32, #tpu.memory_space<vmem>>, vector<128x128xf32>
    %c128 = arith.constant 128 : index
    %c0_1 = arith.constant 0 : index
    %1 = vector.load %arg2[%c128, %c0_1] : memref<264x128xf32, #tpu.memory_space<vmem>>, vector<32x128xf32>
    %c160 = arith.constant 160 : index
    %c0_2 = arith.constant 0 : index
    %2 = vector.load %arg2[%c160, %c0_2] : memref<264x128xf32, #tpu.memory_space<vmem>>, vector<64x128xf32>
    %c224 = arith.constant 224 : index
    %c0_3 = arith.constant 0 : index
    %3 = vector.load %arg2[%c224, %c0_3] : memref<264x128xf32, #tpu.memory_space<vmem>>, vector<32x128xf32>
    %c256 = arith.constant 256 : index
    %c0_4 = arith.constant 0 : index
    %4 = vector.load %arg2[%c256, %c0_4] : memref<264x128xf32, #tpu.memory_space<vmem>>, vector<8x128xf32>
    %c0_5 = arith.constant 0 : index
    %c0_6 = arith.constant 0 : index
    %c0_7 = arith.constant 0 : index
    %5 = vector.load %arg1[%c0_5, %c0_6, %c0_7] : memref<8x8x128xf32, #tpu.memory_space<vmem>>, vector<8x8x128xf32>
    %6 = vector.shape_cast %5 : vector<8x8x128xf32> to vector<64x128xf32>
    %cst = arith.constant dense<0.000000e+00> : vector<64x128xf32>
    %7 = tpu.matmul %6, %0, %cst {dimension_numbers = #tpu.dot_dimension_numbers<[1], [0], [0], [1], [0, 0, 1, 1], [], []>, precision = #tpu.contract_precision<fp32>} : vector<64x128xf32>, vector<128x128xf32>, vector<64x128xf32> -> vector<64x128xf32>
    %8 = arith.addf %7, %2 : vector<64x128xf32>
    %cst_8 = arith.constant 0.000000e+00 : f32
    %9 = vector.broadcast %cst_8 : f32 to vector<8x32xf32>
    %cst_9 = arith.constant 0.000000e+00 : f32
    %10 = vector.broadcast %cst_9 : f32 to vector<8x32xf32>
    %11 = vector.extract_strided_slice %8 {offsets = [0, 0], sizes = [8, 128], strides = [1, 1]} : vector<64x128xf32> to vector<8x128xf32>
    %cst_10 = arith.constant dense<0.000000e+00> : vector<8x128xf32>
    %12 = tpu.matmul %9, %1, %cst_10 {dimension_numbers = #tpu.dot_dimension_numbers<[1], [0], [0], [1], [0, 0, 1, 1], [], []>, precision = #tpu.contract_precision<fp32>} : vector<8x32xf32>, vector<32x128xf32>, vector<8x128xf32> -> vector<8x128xf32>
    %13 = arith.addf %11, %12 : vector<8x128xf32>
    %14 = arith.negf %13 : vector<8x128xf32>
    %15 = math.exp %14 : vector<8x128xf32>
    %cst_11 = arith.constant 1.000000e+00 : f32
    %16 = vector.broadcast %cst_11 : f32 to vector<8x128xf32>
    %17 = arith.addf %16, %15 : vector<8x128xf32>
    %18 = arith.divf %16, %17 : vector<8x128xf32>
    %19 = math.tanh %13 : vector<8x128xf32>
    %20 = vector.extract_strided_slice %18 {offsets = [0, 0], sizes = [8, 32], strides = [1, 1]} : vector<8x128xf32> to vector<8x32xf32>
    %21 = vector.extract_strided_slice %18 {offsets = [0, 32], sizes = [8, 32], strides = [1, 1]} : vector<8x128xf32> to vector<8x32xf32>
    %22 = vector.extract_strided_slice %19 {offsets = [0, 64], sizes = [8, 32], strides = [1, 1]} : vector<8x128xf32> to vector<8x32xf32>
    %23 = vector.extract_strided_slice %18 {offsets = [0, 96], sizes = [8, 32], strides = [1, 1]} : vector<8x128xf32> to vector<8x32xf32>
    %24 = arith.mulf %21, %10 : vector<8x32xf32>
    %25 = arith.mulf %20, %22 : vector<8x32xf32>
    %26 = arith.addf %24, %25 : vector<8x32xf32>
    %27 = math.tanh %26 : vector<8x32xf32>
    %28 = arith.mulf %23, %27 : vector<8x32xf32>
    %29 = vector.extract_strided_slice %8 {offsets = [8, 0], sizes = [8, 128], strides = [1, 1]} : vector<64x128xf32> to vector<8x128xf32>
    %cst_12 = arith.constant dense<0.000000e+00> : vector<8x128xf32>
    %30 = tpu.matmul %28, %1, %cst_12 {dimension_numbers = #tpu.dot_dimension_numbers<[1], [0], [0], [1], [0, 0, 1, 1], [], []>, precision = #tpu.contract_precision<fp32>} : vector<8x32xf32>, vector<32x128xf32>, vector<8x128xf32> -> vector<8x128xf32>
    %31 = arith.addf %29, %30 : vector<8x128xf32>
    %32 = arith.negf %31 : vector<8x128xf32>
    %33 = math.exp %32 : vector<8x128xf32>
    %cst_13 = arith.constant 1.000000e+00 : f32
    %34 = vector.broadcast %cst_13 : f32 to vector<8x128xf32>
    %35 = arith.addf %34, %33 : vector<8x128xf32>
    %36 = arith.divf %34, %35 : vector<8x128xf32>
    %37 = math.tanh %31 : vector<8x128xf32>
    %38 = vector.extract_strided_slice %36 {offsets = [0, 0], sizes = [8, 32], strides = [1, 1]} : vector<8x128xf32> to vector<8x32xf32>
    %39 = vector.extract_strided_slice %36 {offsets = [0, 32], sizes = [8, 32], strides = [1, 1]} : vector<8x128xf32> to vector<8x32xf32>
    %40 = vector.extract_strided_slice %37 {offsets = [0, 64], sizes = [8, 32], strides = [1, 1]} : vector<8x128xf32> to vector<8x32xf32>
    %41 = vector.extract_strided_slice %36 {offsets = [0, 96], sizes = [8, 32], strides = [1, 1]} : vector<8x128xf32> to vector<8x32xf32>
    %42 = arith.mulf %39, %26 : vector<8x32xf32>
    %43 = arith.mulf %38, %40 : vector<8x32xf32>
    %44 = arith.addf %42, %43 : vector<8x32xf32>
    %45 = math.tanh %44 : vector<8x32xf32>
    %46 = arith.mulf %41, %45 : vector<8x32xf32>
    %47 = vector.extract_strided_slice %8 {offsets = [16, 0], sizes = [8, 128], strides = [1, 1]} : vector<64x128xf32> to vector<8x128xf32>
    %cst_14 = arith.constant dense<0.000000e+00> : vector<8x128xf32>
    %48 = tpu.matmul %46, %1, %cst_14 {dimension_numbers = #tpu.dot_dimension_numbers<[1], [0], [0], [1], [0, 0, 1, 1], [], []>, precision = #tpu.contract_precision<fp32>} : vector<8x32xf32>, vector<32x128xf32>, vector<8x128xf32> -> vector<8x128xf32>
    %49 = arith.addf %47, %48 : vector<8x128xf32>
    %50 = arith.negf %49 : vector<8x128xf32>
    %51 = math.exp %50 : vector<8x128xf32>
    %cst_15 = arith.constant 1.000000e+00 : f32
    %52 = vector.broadcast %cst_15 : f32 to vector<8x128xf32>
    %53 = arith.addf %52, %51 : vector<8x128xf32>
    %54 = arith.divf %52, %53 : vector<8x128xf32>
    %55 = math.tanh %49 : vector<8x128xf32>
    %56 = vector.extract_strided_slice %54 {offsets = [0, 0], sizes = [8, 32], strides = [1, 1]} : vector<8x128xf32> to vector<8x32xf32>
    %57 = vector.extract_strided_slice %54 {offsets = [0, 32], sizes = [8, 32], strides = [1, 1]} : vector<8x128xf32> to vector<8x32xf32>
    %58 = vector.extract_strided_slice %55 {offsets = [0, 64], sizes = [8, 32], strides = [1, 1]} : vector<8x128xf32> to vector<8x32xf32>
    %59 = vector.extract_strided_slice %54 {offsets = [0, 96], sizes = [8, 32], strides = [1, 1]} : vector<8x128xf32> to vector<8x32xf32>
    %60 = arith.mulf %57, %44 : vector<8x32xf32>
    %61 = arith.mulf %56, %58 : vector<8x32xf32>
    %62 = arith.addf %60, %61 : vector<8x32xf32>
    %63 = math.tanh %62 : vector<8x32xf32>
    %64 = arith.mulf %59, %63 : vector<8x32xf32>
    %65 = vector.extract_strided_slice %8 {offsets = [24, 0], sizes = [8, 128], strides = [1, 1]} : vector<64x128xf32> to vector<8x128xf32>
    %cst_16 = arith.constant dense<0.000000e+00> : vector<8x128xf32>
    %66 = tpu.matmul %64, %1, %cst_16 {dimension_numbers = #tpu.dot_dimension_numbers<[1], [0], [0], [1], [0, 0, 1, 1], [], []>, precision = #tpu.contract_precision<fp32>} : vector<8x32xf32>, vector<32x128xf32>, vector<8x128xf32> -> vector<8x128xf32>
    %67 = arith.addf %65, %66 : vector<8x128xf32>
    %68 = arith.negf %67 : vector<8x128xf32>
    %69 = math.exp %68 : vector<8x128xf32>
    %cst_17 = arith.constant 1.000000e+00 : f32
    %70 = vector.broadcast %cst_17 : f32 to vector<8x128xf32>
    %71 = arith.addf %70, %69 : vector<8x128xf32>
    %72 = arith.divf %70, %71 : vector<8x128xf32>
    %73 = math.tanh %67 : vector<8x128xf32>
    %74 = vector.extract_strided_slice %72 {offsets = [0, 0], sizes = [8, 32], strides = [1, 1]} : vector<8x128xf32> to vector<8x32xf32>
    %75 = vector.extract_strided_slice %72 {offsets = [0, 32], sizes = [8, 32], strides = [1, 1]} : vector<8x128xf32> to vector<8x32xf32>
    %76 = vector.extract_strided_slice %73 {offsets = [0, 64], sizes = [8, 32], strides = [1, 1]} : vector<8x128xf32> to vector<8x32xf32>
    %77 = vector.extract_strided_slice %72 {offsets = [0, 96], sizes = [8, 32], strides = [1, 1]} : vector<8x128xf32> to vector<8x32xf32>
    %78 = arith.mulf %75, %62 : vector<8x32xf32>
    %79 = arith.mulf %74, %76 : vector<8x32xf32>
    %80 = arith.addf %78, %79 : vector<8x32xf32>
    %81 = math.tanh %80 : vector<8x32xf32>
    %82 = arith.mulf %77, %81 : vector<8x32xf32>
    %83 = vector.extract_strided_slice %8 {offsets = [32, 0], sizes = [8, 128], strides = [1, 1]} : vector<64x128xf32> to vector<8x128xf32>
    %cst_18 = arith.constant dense<0.000000e+00> : vector<8x128xf32>
    %84 = tpu.matmul %82, %1, %cst_18 {dimension_numbers = #tpu.dot_dimension_numbers<[1], [0], [0], [1], [0, 0, 1, 1], [], []>, precision = #tpu.contract_precision<fp32>} : vector<8x32xf32>, vector<32x128xf32>, vector<8x128xf32> -> vector<8x128xf32>
    %85 = arith.addf %83, %84 : vector<8x128xf32>
    %86 = arith.negf %85 : vector<8x128xf32>
    %87 = math.exp %86 : vector<8x128xf32>
    %cst_19 = arith.constant 1.000000e+00 : f32
    %88 = vector.broadcast %cst_19 : f32 to vector<8x128xf32>
    %89 = arith.addf %88, %87 : vector<8x128xf32>
    %90 = arith.divf %88, %89 : vector<8x128xf32>
    %91 = math.tanh %85 : vector<8x128xf32>
    %92 = vector.extract_strided_slice %90 {offsets = [0, 0], sizes = [8, 32], strides = [1, 1]} : vector<8x128xf32> to vector<8x32xf32>
    %93 = vector.extract_strided_slice %90 {offsets = [0, 32], sizes = [8, 32], strides = [1, 1]} : vector<8x128xf32> to vector<8x32xf32>
    %94 = vector.extract_strided_slice %91 {offsets = [0, 64], sizes = [8, 32], strides = [1, 1]} : vector<8x128xf32> to vector<8x32xf32>
    %95 = vector.extract_strided_slice %90 {offsets = [0, 96], sizes = [8, 32], strides = [1, 1]} : vector<8x128xf32> to vector<8x32xf32>
    %96 = arith.mulf %93, %80 : vector<8x32xf32>
    %97 = arith.mulf %92, %94 : vector<8x32xf32>
    %98 = arith.addf %96, %97 : vector<8x32xf32>
    %99 = math.tanh %98 : vector<8x32xf32>
    %100 = arith.mulf %95, %99 : vector<8x32xf32>
    %101 = vector.extract_strided_slice %8 {offsets = [40, 0], sizes = [8, 128], strides = [1, 1]} : vector<64x128xf32> to vector<8x128xf32>
    %cst_20 = arith.constant dense<0.000000e+00> : vector<8x128xf32>
    %102 = tpu.matmul %100, %1, %cst_20 {dimension_numbers = #tpu.dot_dimension_numbers<[1], [0], [0], [1], [0, 0, 1, 1], [], []>, precision = #tpu.contract_precision<fp32>} : vector<8x32xf32>, vector<32x128xf32>, vector<8x128xf32> -> vector<8x128xf32>
    %103 = arith.addf %101, %102 : vector<8x128xf32>
    %104 = arith.negf %103 : vector<8x128xf32>
    %105 = math.exp %104 : vector<8x128xf32>
    %cst_21 = arith.constant 1.000000e+00 : f32
    %106 = vector.broadcast %cst_21 : f32 to vector<8x128xf32>
    %107 = arith.addf %106, %105 : vector<8x128xf32>
    %108 = arith.divf %106, %107 : vector<8x128xf32>
    %109 = math.tanh %103 : vector<8x128xf32>
    %110 = vector.extract_strided_slice %108 {offsets = [0, 0], sizes = [8, 32], strides = [1, 1]} : vector<8x128xf32> to vector<8x32xf32>
    %111 = vector.extract_strided_slice %108 {offsets = [0, 32], sizes = [8, 32], strides = [1, 1]} : vector<8x128xf32> to vector<8x32xf32>
    %112 = vector.extract_strided_slice %109 {offsets = [0, 64], sizes = [8, 32], strides = [1, 1]} : vector<8x128xf32> to vector<8x32xf32>
    %113 = vector.extract_strided_slice %108 {offsets = [0, 96], sizes = [8, 32], strides = [1, 1]} : vector<8x128xf32> to vector<8x32xf32>
    %114 = arith.mulf %111, %98 : vector<8x32xf32>
    %115 = arith.mulf %110, %112 : vector<8x32xf32>
    %116 = arith.addf %114, %115 : vector<8x32xf32>
    %117 = math.tanh %116 : vector<8x32xf32>
    %118 = arith.mulf %113, %117 : vector<8x32xf32>
    %119 = vector.extract_strided_slice %8 {offsets = [48, 0], sizes = [8, 128], strides = [1, 1]} : vector<64x128xf32> to vector<8x128xf32>
    %cst_22 = arith.constant dense<0.000000e+00> : vector<8x128xf32>
    %120 = tpu.matmul %118, %1, %cst_22 {dimension_numbers = #tpu.dot_dimension_numbers<[1], [0], [0], [1], [0, 0, 1, 1], [], []>, precision = #tpu.contract_precision<fp32>} : vector<8x32xf32>, vector<32x128xf32>, vector<8x128xf32> -> vector<8x128xf32>
    %121 = arith.addf %119, %120 : vector<8x128xf32>
    %122 = arith.negf %121 : vector<8x128xf32>
    %123 = math.exp %122 : vector<8x128xf32>
    %cst_23 = arith.constant 1.000000e+00 : f32
    %124 = vector.broadcast %cst_23 : f32 to vector<8x128xf32>
    %125 = arith.addf %124, %123 : vector<8x128xf32>
    %126 = arith.divf %124, %125 : vector<8x128xf32>
    %127 = math.tanh %121 : vector<8x128xf32>
    %128 = vector.extract_strided_slice %126 {offsets = [0, 0], sizes = [8, 32], strides = [1, 1]} : vector<8x128xf32> to vector<8x32xf32>
    %129 = vector.extract_strided_slice %126 {offsets = [0, 32], sizes = [8, 32], strides = [1, 1]} : vector<8x128xf32> to vector<8x32xf32>
    %130 = vector.extract_strided_slice %127 {offsets = [0, 64], sizes = [8, 32], strides = [1, 1]} : vector<8x128xf32> to vector<8x32xf32>
    %131 = vector.extract_strided_slice %126 {offsets = [0, 96], sizes = [8, 32], strides = [1, 1]} : vector<8x128xf32> to vector<8x32xf32>
    %132 = arith.mulf %129, %116 : vector<8x32xf32>
    %133 = arith.mulf %128, %130 : vector<8x32xf32>
    %134 = arith.addf %132, %133 : vector<8x32xf32>
    %135 = math.tanh %134 : vector<8x32xf32>
    %136 = arith.mulf %131, %135 : vector<8x32xf32>
    %137 = vector.extract_strided_slice %8 {offsets = [56, 0], sizes = [8, 128], strides = [1, 1]} : vector<64x128xf32> to vector<8x128xf32>
    %cst_24 = arith.constant dense<0.000000e+00> : vector<8x128xf32>
    %138 = tpu.matmul %136, %1, %cst_24 {dimension_numbers = #tpu.dot_dimension_numbers<[1], [0], [0], [1], [0, 0, 1, 1], [], []>, precision = #tpu.contract_precision<fp32>} : vector<8x32xf32>, vector<32x128xf32>, vector<8x128xf32> -> vector<8x128xf32>
    %139 = arith.addf %137, %138 : vector<8x128xf32>
    %140 = arith.negf %139 : vector<8x128xf32>
    %141 = math.exp %140 : vector<8x128xf32>
    %cst_25 = arith.constant 1.000000e+00 : f32
    %142 = vector.broadcast %cst_25 : f32 to vector<8x128xf32>
    %143 = arith.addf %142, %141 : vector<8x128xf32>
    %144 = arith.divf %142, %143 : vector<8x128xf32>
    %145 = math.tanh %139 : vector<8x128xf32>
    %146 = vector.extract_strided_slice %144 {offsets = [0, 0], sizes = [8, 32], strides = [1, 1]} : vector<8x128xf32> to vector<8x32xf32>
    %147 = vector.extract_strided_slice %144 {offsets = [0, 32], sizes = [8, 32], strides = [1, 1]} : vector<8x128xf32> to vector<8x32xf32>
    %148 = vector.extract_strided_slice %145 {offsets = [0, 64], sizes = [8, 32], strides = [1, 1]} : vector<8x128xf32> to vector<8x32xf32>
    %149 = arith.mulf %147, %134 : vector<8x32xf32>
    %150 = arith.mulf %146, %148 : vector<8x32xf32>
    %151 = arith.addf %149, %150 : vector<8x32xf32>
    %cst_26 = arith.constant dense<0.000000e+00> : vector<8x128xf32>
    %152 = tpu.matmul %151, %3, %cst_26 {dimension_numbers = #tpu.dot_dimension_numbers<[1], [0], [0], [1], [0, 0, 1, 1], [], []>, precision = #tpu.contract_precision<fp32>} : vector<8x32xf32>, vector<32x128xf32>, vector<8x128xf32> -> vector<8x128xf32>
    %153 = arith.addf %152, %4 : vector<8x128xf32>
    %c0_27 = arith.constant 0 : index
    %c0_28 = arith.constant 0 : index
    %154 = vector.load %arg3[%c0_27, %c0_28] : memref<8x128xf32, #tpu.memory_space<vmem>>, vector<8x128xf32>
    tpu.vector_store %arg3[%c0_27, %c0_28], %153 {strides = array<i32>} : memref<8x128xf32, #tpu.memory_space<vmem>>, vector<8x128xf32>,
    return
  }
  func.func @transform_0(%arg0: i32) -> (i32, i32, i32) {
    %c0_i32 = arith.constant 0 : i32
    %c0_i32_0 = arith.constant 0 : i32
    %c0_i32_1 = arith.constant 0 : i32
    %c0_i32_2 = arith.constant 0 : i32
    return %c0_i32, %c0_i32_0, %c0_i32_1 : i32, i32, i32
  }
  func.func @transform_1(%arg0: i32) -> (i32, i32) {
    %c0_i32 = arith.constant 0 : i32
    %c0_i32_0 = arith.constant 0 : i32
    %c0_i32_1 = arith.constant 0 : i32
    return %c0_i32, %c0_i32_0 : i32, i32
  }
  func.func @transform_2(%arg0: i32) -> (i32, i32) {
    %c0_i32 = arith.constant 0 : i32
    %c0_i32_0 = arith.constant 0 : i32
    %c0_i32_1 = arith.constant 0 : i32
    return %c0_i32, %c0_i32_0 : i32, i32
  }
}

</mosaic_0001>

<bundles_post_ra>
// kernel: lstm_head_forward.1
= control target key start
LH: loop header
LB: loop body
LE: loop exit
PB: predicated region body
PF: predicated region fallthrough
CT: control target
= control target key end

     0   :  { %vm7605_vm0 = vmmov 0   ;;  %s7607_s10 = smov 64   ;;  %s7608_s11 = smov 32   ;;  %vm994_vm1 = vcmask 261120   ;;  %s8624_s1 = inlined_call_operand.vmem [shape: f32[264,128], index: 1, kind: input, shape index: {}]   ;;  %s8625_s0 = inlined_call_operand.vmem [shape: f32[8,8,128], index: 0, kind: input, shape index: {}]   ;;  %s8626_s2 = inlined_call_operand.vmem [shape: f32[8,128], index: 2, kind: output, shape index: {}]  }
   0x1   :  { %v11_v0 = vld [vmem:[%s8624_s1] sm:$0xff]  ;;  %v12_v1 = vld [vmem:[%s8624_s1 + $0x8] sm:$0xff]  ;;  %v13_v2 = vld [vmem:[%s8624_s1 + $0x10] sm:$0xff]  ;;  %s7609_s5 = smov 96  }
   0x2   :  { %v53_v3 = vand.u32 4294901760, %v11_v0  ;;  %v56_v4 = vand.u32 4294901760, %v12_v1  ;;  %v14_v5 = vld [vmem:[%s8624_s1 + $0x18] sm:$0xff]  ;;  %v59_v6 = vand.u32 4294901760, %v13_v2  ;;  %v15_v7 = vld [vmem:[%s8624_s1 + $0x20] sm:$0xff]  ;;  %v16_v8 = vld [vmem:[%s8624_s1 + $0x28] sm:$0xff] }
   0x3   :  { %v62_v9 = vand.u32 4294901760, %v14_v5  ;;  %v65_v11 = vand.u32 4294901760, %v15_v7  ;;  %v68_v12 = vand.u32 4294901760, %v16_v8  ;;  %v7650_v14 = vld [vmem:[%s8624_s1 + $0x30] sm:$0xff]  ;;  %v7655_v15 = vld [vmem:[%s8624_s1 + $0x38] sm:$0xff]  ;;  %v44_v16 = vld [vmem:[%s8625_s0] sm:$0xff] }
   0x4   :  { %v7643_v10 = vpack.c.bf16 %v56_v4, %v53_v3  ;;  %v7662_v17 = vand.u32 4294901760, %v44_v16  ;;  %v71_v19 = vand.u32 4294901760, %v7650_v14  ;;  %v74_v20 = vand.u32 4294901760, %v7655_v15  ;;  %v7672_v21 = vld [vmem:[%s8624_s1 + $0x40] sm:$0xff]  ;;  %v7677_v22 = vld [vmem:[%s8624_s1 + $0x48] sm:$0xff]  ;;  %v7701_v31 = vld [vmem:[%s8624_s1 + $0x50] sm:$0xff] }
   0x5   :  { %v7645_v13 = vpack.c.bf16 %v62_v9, %v59_v6  ;;  %v7665_v18 = vpack.c.bf16 %v68_v12, %v65_v11  ;;  %v45_v24 = vld [vmem:[%s8625_s0 + $0x8] sm:$0xff]  ;;  %v7685_v25 = vsub.f32 %v11_v0, %v53_v3  ;;  %v7687_v26 = vsub.f32 %v12_v1, %v56_v4  ;;  %v7710_v34 = vld [vmem:[%s8624_s1 + $0x58] sm:$0xff]  ;;  %v7734_v45 = vld [vmem:[%s8624_s1 + $0x60] sm:$0xff] }
   0x6   :  { %6883 = vmatprep.subr.bf16.mxu0 %v7643_v10  ;;  %v7680_v23 = vsub.f32 %v44_v16, %v7662_v17  ;;  %v77_v27 = vand.u32 4294901760, %v7672_v21  ;;  %v7695_v29 = vpack.c.bf16 %v74_v20, %v71_v19  ;;  %v80_v30 = vand.u32 4294901760, %v7677_v22  ;;  %v7739_v46 = vld [vmem:[%s8624_s1 + $0x68] sm:$0xff]  ;;  %v46_v49 = vld [vmem:[%s8625_s0 + $0x10] sm:$0xff]  ;;  %v47_v56 = vld [vmem:[%s8625_s0 + $0x18] sm:$0xff] }
   0x7   :  { %6885 = vmatpush3.bf16.msra.mxu0 %v7643_v10  ;;  %8665 = vst [vmem:[#allocation2_spill] sm:$0xff] %v7665_v18  ;;  %v7703_v32 = vand.u32 4294901760, %v45_v24  ;;  %v7705_v33 = vsub.f32 %v13_v2, %v59_v6  ;;  %v7715_v36 = vsub.f32 %v14_v5, %v62_v9  ;;  %v7717_v37 = vsub.f32 %v15_v7, %v65_v11  ;;  %v7751_v50 = vld [vmem:[%s8624_s1 + $0x70] sm:$0xff]  ;;  %v7771_v59 = vld [vmem:[%s8624_s1 + $0x78] sm:$0xff]  ;;  %v48_v5 = vld [vmem:[%s8625_s0 + $0x20] sm:$0xff] }
   0x8   :  { %6887 = vmatprep.subr.bf16.mxu0 %v7645_v13  ;;  %v8628_v28 = vand.u32 4294901760, %v7680_v23  ;;  %8666 = vst [vmem:[#allocation3_spill] sm:$0xff] %v7695_v29  ;;  %v7719_v38 = vsub.f32 %v16_v8, %v68_v12  ;;  %v8636_v39 = vand.u32 4294901760, %v7685_v25  ;;  %v8635_v40 = vand.u32 4294901760, %v7687_v26 }
   0x9   :  { %v83_v41 = vand.u32 4294901760, %v7701_v31  ;;  %v7728_v43 = vpack.c.bf16 %v80_v30, %v77_v27  ;;  %v86_v44 = vand.u32 4294901760, %v7710_v34  ;;  %v7742_v47 = vsub.f32 %v45_v24, %v7703_v32 }
   0xa   :  { %v136_v35 = vsub.f32 %v7680_v23, %v8628_v28  ;;  %v8632_v48 = vand.u32 4294901760, %v7705_v33  ;;  %v8631_v51 = vand.u32 4294901760, %v7715_v36  ;;  %v8630_v52 = vand.u32 4294901760, %v7717_v37  ;;  %v51_v28 = vld [vmem:[%s8625_s0 + $0x38] sm:$0xff] }
   0xb   :  { %6889 = vmatpush3.bf16.msra.mxu0 %v7645_v13  ;;  %8667 = vst [vmem:[#allocation4_spill] sm:$0xff] %v7728_v43  ;;  %v8629_v53 = vand.u32 4294901760, %v7719_v38  ;;  %v217_v54 = vsub.f32 %v7685_v25, %v8636_v39  ;;  %v224_v55 = vsub.f32 %v7687_v26, %v8635_v40  ;;  %v89_v57 = vand.u32 4294901760, %v7734_v45 }
   0xc   :  { %6891 = vmatprep.subr.bf16.mxu0 %v7665_v18  ;;  %v137_v42 = vand.u32 4294901760, %v136_v35  ;;  %v92_v58 = vand.u32 4294901760, %v7739_v46  ;;  %v7773_v60 = vand.u32 4294901760, %v46_v49  ;;  %v7780_v61 = vpack.c.bf16 %v86_v44, %v83_v41 }
   0xd   :  { %v95_v62 = vand.u32 4294901760, %v7751_v50  ;;  %v8627_v63 = vand.u32 4294901760, %v7742_v47  ;;  %v231_v0 = vsub.f32 %v7705_v33, %v8632_v48  ;;  %v238_v1 = vsub.f32 %v7715_v36, %v8631_v51 }
   0xe   :  { %6056 = vmatprep.mubr.f32.mxu0 %v137_v42  ;;  %8668 = vst [vmem:[#allocation5_spill] sm:$0xff] %v7780_v61  ;;  %v245_v2 = vsub.f32 %v7717_v37, %v8630_v52  ;;  %v252_v3 = vsub.f32 %v7719_v38, %v8629_v53  ;;  %v7796_v4 = vand.u32 4294901760, %v47_v56  ;;  %v98_v6 = vand.u32 4294901760, %v7771_v59 }
   0xf   :  { %6893 = vmatpush3.bf16.msra.mxu0 %v7665_v18  ;;  %v218_v7 = vand.u32 4294901760, %v217_v54  ;;  %v225_v8 = vand.u32 4294901760, %v224_v55  ;;  %v7803_v9 = vsub.f32 %v7650_v14, %v71_v19  ;;  %v7810_v11 = vpack.c.bf16 %v92_v58, %v89_v57  ;;  %v50_v55 = vld [vmem:[%s8625_s0 + $0x30] sm:$0xff] }
  0x10   :  { %6895 = vmatprep.subr.bf16.mxu0 %v7695_v29  ;;  %v7815_v12 = vsub.f32 %v7655_v15, %v74_v20  ;;  %v7818_v16 = vsub.f32 %v46_v49, %v7773_v60  ;;  %v7824_v14 = vsub.f32 %v7742_v47, %v8627_v63  ;;  %v7827_v19 = vsub.f32 %v7672_v21, %v77_v27  ;;  %v49_v15 = vld [vmem:[%s8625_s0 + $0x28] sm:$0xff] }
  0x11   :  { %8669 = vst [vmem:[#allocation6_spill] sm:$0xff] %v7810_v11  ;;  %v7830_v24 = vsub.f32 %v47_v56, %v7796_v4  ;;  %v7832_v35 = vand.u32 4294901760, %v48_v5  ;;  %v232_v20 = vand.u32 4294901760, %v231_v0  ;;  %v239_v42 = vand.u32 4294901760, %v238_v1 }
  0x12   :  { %v246_v49 = vand.u32 4294901760, %v245_v2  ;;  %v253_v54 = vand.u32 4294901760, %v252_v3  ;;  %v7840_v63 = vpack.c.bf16 %v98_v6, %v95_v62  ;;  %v6914_v21 = vpack.c.bf16 %v225_v8, %v218_v7 }
  0x13   :  { %6897 = vmatpush3.bf16.msra.mxu0 %v7695_v29  ;;  %v8634_v27 = vand.u32 4294901760, %v7803_v9  ;;  %v7846_v56 = vsub.f32 %v7677_v22, %v80_v30  ;;  %v265_v0 = vand.u32 4294901760, %v7815_v12  ;;  %v8633_v1 = vand.u32 4294901760, %v7818_v16 }
  0x14   :  { %6899 = vmatprep.subr.bf16.mxu0 %v7728_v43  ;;  %8670 = vst [vmem:[#allocation7_spill] sm:$0xff] %v7840_v63  ;;  %v7852_v2 = vsub.f32 %v48_v5, %v7832_v35  ;;  %v7854_v3 = vand.u32 4294901760, %v49_v15  ;;  %v147_v7 = vand.u32 4294901760, %v7824_v14  ;;  %v272_v8 = vand.u32 4294901760, %v7827_v19 }
  0x15   :  { %v8637_v22 = vand.u32 4294901760, %v7830_v24  ;;  %v7860_v30 = vand.u32 4294901760, %v50_v55  ;;  %v7865_v53 = vpack.c.bf16 %v239_v42, %v232_v20  ;;  %v7867_v5 = vpack.c.bf16 %v253_v54, %v246_v49 }
  0x16   :  { %v7872_v52 = vsub.f32 %v7701_v31, %v83_v41  ;;  %v7875_v14 = vsub.f32 %v49_v15, %v7854_v3  ;;  %v7880_v51 = vsub.f32 %v7803_v9, %v8634_v27  ;;  %v279_v48 = vand.u32 4294901760, %v7846_v56 }
  0x17   :  { %6901 = vmatpush3.bf16.msra.mxu0 %v7728_v43  ;;  %v7886_v20 = vsub.f32 %v7710_v34, %v86_v44  ;;  %v7889_v42 = vsub.f32 %v50_v55, %v7860_v30  ;;  %v7893_v31 = vsub.f32 %v7815_v12, %v265_v0  ;;  %v156_v41 = vsub.f32 %v7818_v16, %v8633_v1 }
  0x18   :  { %6903 = vmatprep.subr.bf16.mxu0 %v7780_v61  ;;  %8671 = vst [vmem:[#allocation8_spill] sm:$0xff] %v7875_v14  ;;  %v8642_v15 = vand.u32 4294901760, %v7852_v2  ;;  %v7899_v49 = vand.u32 4294901760, %v51_v28  ;;  %v7903_v34 = vsub.f32 %v7827_v19, %v272_v8  ;;  %v166_v44 = vsub.f32 %v7830_v24, %v8637_v22 }
  0x19   :  { %8672 = vst [vmem:[#allocation9_spill] sm:$0xff] %v7889_v42  ;;  %v7911_v54 = vsub.f32 %v7734_v45, %v89_v57  ;;  %v7916_v55 = vsub.f32 %v7739_v46, %v92_v58  ;;  %v8645_v1 = vand.u32 4294901760, %v7875_v14  ;;  %v7921_v40 = vsub.f32 %v7751_v50, %v95_v62 }
  0x1a   :  { %v7924_v39 = vsub.f32 %v7771_v59, %v98_v6  ;;  %v260_v22 = vand.u32 4294901760, %v7880_v51  ;;  %v7928_v45 = vsub.f32 %v7846_v56, %v279_v48  ;;  %v286_v57 = vand.u32 4294901760, %v7872_v52 }
  0x1b   :  { %6905 = vmatpush3.bf16.msra.mxu0 %v7780_v61  ;;  %v7932_v46 = vsub.f32 %v51_v28, %v7899_v49  ;;  %v267_v58 = vand.u32 4294901760, %v7893_v31  ;;  %v157_v27 = vand.u32 4294901760, %v156_v41  ;;  %v293_v50 = vand.u32 4294901760, %v7886_v20 }
  0x1c   :  { %6907 = vmatprep.subr.bf16.mxu0 %v7810_v11  ;;  %v176_v59 = vsub.f32 %v7852_v2, %v8642_v15  ;;  %v274_v51 = vand.u32 4294901760, %v7903_v34  ;;  %v167_v62 = vand.u32 4294901760, %v166_v44  ;;  %v300_v6 = vand.u32 4294901760, %v7911_v54  ;;  %v7954_v34 = vld [vmem:[%s8624_s1 + $0x80] sm:$0xff] }
  0x1d   :  { %v307_v28 = vand.u32 4294901760, %v7916_v55  ;;  %v8673_v31 = vand.u32 4294901760, %v7889_v42  ;;  %v8674_v61 = vand.u32 4294901760, %v7685_v25  ;;  %v8678_v29 = vand.u32 4294901760, %v7715_v36 }
  0x1e   :  { %v8680_v15 = vand.u32 4294901760, %v7717_v37  ;;  %v7994_v44 = vpack.c.bf16 %v293_v50, %v286_v57 }
  0x1f   :  { %6909 = vmatpush3.bf16.msra.mxu0 %v7810_v11  ;;  %v196_v41 = vsub.f32 %v7889_v42, %v8673_v31  ;;  %v314_v11 = vand.u32 4294901760, %v7921_v40  ;;  %v8677_v31 = vand.u32 4294901760, %v7705_v33 }
  0x20   :  { %6911 = vmatprep.subr.bf16.mxu0 %v7840_v63  ;;  %8685 = vst [vmem:[#allocation14_spill] sm:$0xff] %v7994_v44  ;;  %v8689_v44 = vand.u32 4294901760, %v7932_v46 }
  0x21   :  { %v7967_v42 = vpack.c.bf16 %v8678_v29, %v8677_v31  ;;  %v7986_v29 = vld [vmem:[%s8624_s1 + $0x98] sm:$0xff]  ;;  %v7992_v31 = vpack.c.bf16 %v279_v48, %v272_v8 }
  0x22   :  { %v1008_v8 = vand.u32 4294901760, %v7986_v29 }
  0x23   :  { %6913 = vmatpush3.bf16.msra.mxu0 %v7840_v63  ;;  %v186_v63 = vsub.f32 %v7875_v14, %v8645_v1  ;;  %v8675_v1 = vand.u32 4294901760, %v7687_v26  ;;  %8679 = vst [vmem:[#allocation11_spill] sm:$0xff] %v7967_v42  ;;  %v8681_v14 = vand.u32 4294901760, %v7719_v38  ;;  %8684 = vst [vmem:[#allocation13_spill] sm:$0xff] %v7992_v31  ;;  %v8687_v42 = vand.u32 4294901760, %v7924_v39 }
  0x24   :  { %6915 = vmatprep.subr.bf16.mxu0 %v6914_v21 }
  0x25   :  { %v7961_v43 = vpack.c.bf16 %v8675_v1, %v8674_v61  ;;  %v7973_v18 = vpack.c.bf16 %v8681_v14, %v8680_v15  ;;  %v7981_v61 = vld [vmem:[%s8624_s1 + $0x90] sm:$0xff]  ;;  %v177_v1 = vand.u32 4294901760, %v176_v59  ;;  %v8683_v14 = vand.u32 4294901760, %v7803_v9 }
  0x26   :  { %6057 = vmatmul.mubr.f32.vlgmr.msra.gmra.mrb[0].mxu0 %v147_v7  ;;  %v28_v7 = vld [vmem:[%s8624_s1 + $0x88] sm:$0xff]  ;;  %v8662_v59 = vmov 0.0|0.0   ;;  %v1005_v48 = vand.u32 4294901760, %v7981_v61 }
  0x27   :  { %8676 = vst [vmem:[#allocation10_spill] sm:$0xff] %v7961_v43  ;;  %8682 = vst [vmem:[#allocation12_spill] sm:$0xff] %v7973_v18  ;;  %6917 = vmatpush3.bf16.msra.mxu0 %v6914_v21  ;;  %6059 = vmatprep.mubr.f32.mxu0 %v157_v27  ;;  %v7990_v15 = vpack.c.bf16 %v265_v0, %v8683_v14  ;;  %v7997_v18 = vpack.c.bf16 %v307_v28, %v300_v6  ;;  %v999_v21 = vand.u32 4294901760, %v7954_v34 }
  0x28   :  { %6919 = vmatprep.subr.bf16.mxu0 %v7865_v53  ;;  %v8001_v43 = vpack.c.bf16 %v8687_v42, %v314_v11  ;;  %v287_v27 = vsub.f32 %v7872_v52, %v286_v57  ;;  %7086 = vmatprep.subr.bf16.mxu1 %v8662_v59  ;;  %v1002_v0 = vand.u32 4294901760, %v28_v7  ;;  %v281_v14 = vand.u32 4294901760, %v7928_v45 }
  0x29   :  { %8686 = vst [vmem:[#allocation15_spill] sm:$0xff] %v7997_v18  ;;  %v187_v18 = vand.u32 4294901760, %v186_v63  ;;  %v206_v42 = vsub.f32 %v7932_v46, %v8689_v44  ;;  %v294_v57 = vsub.f32 %v7886_v20, %v293_v50  ;;  %v197_v59 = vand.u32 4294901760, %v196_v41 }
  0x2a   :  { %8688 = vst [vmem:[#allocation16_spill] sm:$0xff] %v8001_v43  ;;  %6060 = vmatmul.mubr.f32.gmra.mrb[2].mxu0 %v167_v62  ;;  %v8013_v43 = vsub.f32 %v7954_v34, %v999_v21  ;;  %v8017_v31 = vsub.f32 %v28_v7, %v1002_v0  ;;  %v6926_v45 = vpack.c.bf16 %v267_v58, %v260_v22  ;;  %v288_v44 = vand.u32 4294901760, %v287_v27 }
  0x2b   :  { %6921 = vmatpush3.bf16.msra.mxu0 %v7865_v53  ;;  %6062 = vmatprep.mubr.f32.mxu0 %v177_v1  ;;  %v8021_v63 = vsub.f32 %v7981_v61, %v1005_v48  ;;  %v8024_v62 = vsub.f32 %v7986_v29, %v1008_v8  ;;  %v7606_v53 = vmov 0.0   ;;  %v207_v50 = vand.u32 4294901760, %v206_v42 }
  0x2c   :  { %6923 = vmatprep.subr.bf16.mxu0 %v7867_v5  ;;  %v8028_v34 = vpack.c.bf16 %v8017_v31, %v8013_v43  ;;  %6318 = vmatprep.mubr.msk.f32.mxu1 %vm7605_vm0, %v7606_v53  ;;  %v301_v22 = vsub.f32 %v7911_v54, %v300_v6  ;;  %v308_v58 = vsub.f32 %v7916_v55, %v307_v28  ;;  %v295_v7 = vand.u32 4294901760, %v294_v57 }
  0x2d   :  { %v6930_v41 = vpack.c.bf16 %v281_v14, %v274_v51  ;;  %v8038_v61 = vpack.c.bf16 %v8024_v62, %v8021_v63  ;;  %v8690_v29 = vmov 0.0|0.0   ;;  %v315_v6 = vsub.f32 %v7921_v40, %v314_v11 }
  0x2e   :  { %6063 = vmatmul.mubr.f32.gmra.mrb[4].mxu0 %v187_v18  ;;  %7088 = vmatpush3.bf16.msra.mxu1 %v8028_v34  ;;  %v302_v18 = vand.u32 4294901760, %v301_v22  ;;  %v6934_v51 = vpack.c.bf16 %v295_v7, %v288_v44  ;;  %v8691_v28 = vand.u32 4294901760, %v7924_v39  ;;  %v8046_v27 = vpack.c.bf16 %v1002_v0, %v999_v21 }
  0x2f   :  { %6925 = vmatpush3.bf16.msra.mxu0 %v7867_v5  ;;  %6065 = vmatprep.mubr.f32.mxu0 %v197_v59  ;;  %v309_v5 = vand.u32 4294901760, %v308_v58  ;;  %v316_v14 = vand.u32 4294901760, %v315_v6  ;;  %v8051_v42 = vpack.c.bf16 %v1008_v8, %v1005_v48  ;;  %v1080_v57 = vand.u32 4294901760, %v8013_v43  ;;  %v8701_v6 = vld [vmem:[#allocation10_spill] sm:$0xff] }
  0x30   :  { %6927 = vmatprep.subr.bf16.mxu0 %v6926_v45  ;;  %7089 = vmatprep.subr.bf16.mxu1 %v8690_v29  ;;  %v322_v1 = vsub.f32 %v7924_v39, %v8691_v28  ;;  %v1087_v21 = vand.u32 4294901760, %v8017_v31  ;;  %v1094_v48 = vand.u32 4294901760, %v8021_v63  ;;  %v1101_v8 = vand.u32 4294901760, %v8024_v62  ;;  %v8704_v28 = vld [vmem:[#allocation11_spill] sm:$0xff] }
  0x31   :  { %v6938_v59 = vpack.c.bf16 %v309_v5, %v302_v18  ;;  %v6950_v58 = vpack.c.bf16 %v7715_v36, %v7705_v33  ;;  %v6962_v33 = vpack.c.bf16 %v7846_v56, %v7827_v19  ;;  %v1081_v36 = vsub.f32 %v8013_v43, %v1080_v57  ;;  %v8699_v18 = vld [vmem:[#allocation6_spill] sm:$0xff]  ;;  %v8700_v5 = vld [vmem:[#allocation7_spill] sm:$0xff] }
  0x32   :  { %6066 = vmatmul.mubr.f32.gmra.mrb[6].mxu0 %v207_v50  ;;  %7091 = vmatpush3.bf16.msra.mxu1 %v8038_v61  ;;  %v323_v11 = vand.u32 4294901760, %v322_v1  ;;  %v6946_v50 = vpack.c.bf16 %v7687_v26, %v7685_v25  ;;  %v8069_v22 = vpack.c.bf16 %v1101_v8, %v1094_v48  ;;  %v6954_v25 = vpack.c.bf16 %v7719_v38, %v7717_v37 }
  0x33   :  { %6929 = vmatpush3.bf16.msra.mxu0 %v6926_v45  ;;  %6100 = vmatprep.mubr.f32.mxu0 %v7662_v17  ;;  %v8060_v45 = vpack.c.bf16 %v1087_v21, %v1080_v57  ;;  %v6958_v26 = vpack.c.bf16 %v7815_v12, %v7803_v9  ;;  %v1088_v37 = vsub.f32 %v8017_v31, %v1087_v21  ;;  %v1082_v38 = vand.u32 4294901760, %v1081_v36  ;;  %v8713_v57 = vld [vmem:[#allocation15_spill] sm:$0xff]  ;;  %v8714_v21 = vld [vmem:[#allocation16_spill] sm:$0xff] }
  0x34   :  { %6931 = vmatprep.subr.bf16.mxu0 %v6930_v41  ;;  %7092 = vmatprep.subr.bf16.mxu1 %v8690_v29  ;;  %v6942_v0 = vpack.c.bf16 %v323_v11, %v316_v14  ;;  %v6966_v43 = vpack.c.bf16 %v7886_v20, %v7872_v52  ;;  %v1095_v19 = vsub.f32 %v8021_v63, %v1094_v48  ;;  %v8694_v20 = vld [vmem:[#allocation9_spill] sm:$0xff]  ;;  %v8697_v63 = vld [vmem:[#allocation4_spill] sm:$0xff]  ;;  %v8705_v1 = vand.u32 4294901760, %v7830_v24  ;;  %v8712_v11 = vld [vmem:[#allocation14_spill] sm:$0xff] }
  0x35   :  { %6319 = vmatmul.mubr.f32.vlgmr.msra.gmra.mrb[0].mxu1 %v7606_v53  ;;  %v1089_v9 = vand.u32 4294901760, %v1088_v37  ;;  %v1102_v56 = vsub.f32 %v8024_v62, %v1101_v8  ;;  %v6970_v44 = vpack.c.bf16 %v7916_v55, %v7911_v54  ;;  %v6974_v52 = vpack.c.bf16 %v7924_v39, %v7921_v40  ;;  %v8692_v39 = vld [vmem:[#allocation2_spill] sm:$0xff]  ;;  %v8693_v40 = vld [vmem:[#allocation8_spill] sm:$0xff]  ;;  %v8695_v54 = vld [vmem:[#allocation3_spill] sm:$0xff] }
  0x36   :  { %7094 = vmatpush3.bf16.msra.mxu1 %v8046_v27  ;;  %6329 = vmatprep.mubr.msk.f32.mxu1 %vm7605_vm0, %v7606_v53  ;;  %v1096_v31 = vand.u32 4294901760, %v1095_v19  ;;  %v8696_v55 = vand.u32 4294901760, %v7680_v23  ;;  %v8698_v62 = vld [vmem:[#allocation5_spill] sm:$0xff]  ;;  %v8707_v14 = vld [vmem:[#allocation12_spill] sm:$0xff] }
  0x37   :  { %6933 = vmatpush3.bf16.msra.mxu0 %v6930_v41  ;;  %7095 = vmatprep.subr.bf16.mxu1 %v8690_v29  ;;  %v8108_v12 = vpack.c.bf16 %v1089_v9, %v1082_v38  ;;  %v1103_v41 = vand.u32 4294901760, %v1102_v56 }
  0x38   :  { %6935 = vmatprep.subr.bf16.mxu0 %v6934_v51 }
  0x39   :  { %v8116_v7 = vpack.c.bf16 %v1103_v41, %v1096_v31 }
  0x3a   :  { %7097 = vmatpush3.bf16.msra.mxu1 %v8051_v42 }
  0x3b   :  { %6937 = vmatpush3.bf16.msra.mxu0 %v6934_v51  ;;  %7098 = vmatprep.subr.bf16.mxu1 %v8690_v29  ;;  %v8703_v51 = vand.u32 4294901760, %v7818_v16 }
  0x3c   :  { %6939 = vmatprep.subr.bf16.mxu0 %v6938_v59 }
  0x3d   :  { %6330 = vmatmul.mubr.f32.vlgmr.msra.gmra.mrb[0].mxu1 %v7606_v53 }
  0x3e   :  { %7100 = vmatpush3.bf16.msra.mxu1 %v8060_v45  ;;  %6340 = vmatprep.mubr.msk.f32.mxu1 %vm7605_vm0, %v7606_v53 }
  0x3f   :  { %6941 = vmatpush3.bf16.msra.mxu0 %v6938_v59  ;;  %7101 = vmatprep.subr.bf16.mxu1 %v8690_v29  ;;  %v8706_v59 = vand.u32 4294901760, %v7852_v2 }
  0x40   :  { %6943 = vmatprep.subr.bf16.mxu0 %v6942_v0 }
  0x42   :  { %7103 = vmatpush3.bf16.msra.mxu1 %v8069_v22 }
  0x43   :  { %6945 = vmatpush3.bf16.msra.mxu0 %v6942_v0  ;;  %7104 = vmatprep.subr.bf16.mxu1 %v8690_v29 }
  0x44   :  { %6947 = vmatprep.subr.bf16.mxu0 %v6946_v50 }
  0x45   :  { %6341 = vmatmul.mubr.f32.vlgmr.msra.gmra.mrb[0].mxu1 %v7606_v53 }
  0x46   :  { %6101 = vmatmul.mubr.f32.vlgmr.msra.gmra.mrb[0].mxu0 %v7703_v32  ;;  %7106 = vmatpush3.bf16.msra.mxu1 %v8046_v27 }
  0x47   :  { %6949 = vmatpush3.bf16.msra.mxu0 %v6946_v50  ;;  %6103 = vmatprep.mubr.f32.mxu0 %v7773_v60 }
  0x48   :  { %6951 = vmatprep.subr.bf16.mxu0 %v6950_v58  ;;  %6351 = vmatprep.mubr.msk.f32.mxu1 %vm7605_vm0, %v7606_v53 }
  0x49   :  { %7107 = vmatprep.subr.bf16.mxu1 %v8690_v29 }
  0x4a   :  { %6104 = vmatmul.mubr.f32.gmra.mrb[2].mxu0 %v7796_v4  ;;  %7109 = vmatpush3.bf16.msra.mxu1 %v8051_v42 }
  0x4b   :  { %6953 = vmatpush3.bf16.msra.mxu0 %v6950_v58  ;;  %6106 = vmatprep.mubr.f32.mxu0 %v7832_v35 }
  0x4c   :  { %6955 = vmatprep.subr.bf16.mxu0 %v6954_v25  ;;  %7110 = vmatprep.subr.bf16.mxu1 %v8690_v29 }
  0x4d   :  { %6352 = vmatmul.mubr.f32.vlgmr.msra.gmra.mrb[0].mxu1 %v7606_v53 }
  0x4e   :  { %6107 = vmatmul.mubr.f32.gmra.mrb[4].mxu0 %v7854_v3  ;;  %7112 = vmatpush3.bf16.msra.mxu1 %v8046_v27 }
  0x4f   :  { %6957 = vmatpush3.bf16.msra.mxu0 %v6954_v25  ;;  %6109 = vmatprep.mubr.f32.mxu0 %v7860_v30 }
  0x50   :  { %6959 = vmatprep.subr.bf16.mxu0 %v6958_v26  ;;  %6362 = vmatprep.mubr.msk.f32.mxu1 %vm7605_vm0, %v7606_v53 }
  0x51   :  { %7113 = vmatprep.subr.bf16.mxu1 %v8690_v29 }
  0x52   :  { %6110 = vmatmul.mubr.f32.gmra.mrb[6].mxu0 %v7899_v49  ;;  %7115 = vmatpush3.bf16.msra.mxu1 %v8051_v42 }
  0x53   :  { %6961 = vmatpush3.bf16.msra.mxu0 %v6958_v26  ;;  %6144 = vmatprep.mubr.f32.mxu0 %v7680_v23  ;;  %v8702_v23 = vand.u32 4294901760, %v7742_v47 }
  0x54   :  { %6963 = vmatprep.subr.bf16.mxu0 %v6962_v33  ;;  %7116 = vmatprep.subr.bf16.mxu1 %v8690_v29 }
  0x57   :  { %6965 = vmatpush3.bf16.msra.mxu0 %v6962_v33 }
  0x58   :  { %6967 = vmatprep.subr.bf16.mxu0 %v6966_v43 }
  0x5b   :  { %6969 = vmatpush3.bf16.msra.mxu0 %v6966_v43 }
  0x5c   :  { %6971 = vmatprep.subr.bf16.mxu0 %v6970_v44 }
  0x5f   :  { %6973 = vmatpush3.bf16.msra.mxu0 %v6970_v44 }
  0x60   :  { %6975 = vmatprep.subr.bf16.mxu0 %v6974_v52 }
  0x63   :  { %6977 = vmatpush3.bf16.msra.mxu0 %v6974_v52 }
  0x64   :  { %6979 = vmatprep.subr.bf16.mxu0 %v7643_v10 }
  0x66   :  { %6145 = vmatmul.mubr.f32.vlgmr.msra.gmra.mrb[0].mxu0 %v7742_v47  ;;  %v8708_v47 = vand.u32 4294901760, %v8693_v40 }
  0x67   :  { %6981 = vmatpush3.bf16.msra.mxu0 %v7643_v10  ;;  %6147 = vmatprep.mubr.f32.mxu0 %v7818_v16  ;;  %v8709_v16 = vand.u32 4294901760, %v8694_v20 }
  0x68   :  { %6983 = vmatprep.subr.bf16.mxu0 %v7645_v13 }
  0x6a   :  { %6148 = vmatmul.mubr.f32.gmra.mrb[2].mxu0 %v7830_v24  ;;  %v8710_v24 = vand.u32 4294901760, %v7932_v46 }
  0x6b   :  { %6985 = vmatpush3.bf16.msra.mxu0 %v7645_v13  ;;  %6150 = vmatprep.mubr.f32.mxu0 %v7852_v2  ;;  %v8711_v2 = vld [vmem:[#allocation13_spill] sm:$0xff] }
  0x6c   :  { %6987 = vmatprep.subr.bf16.mxu0 %v8692_v39 }
  0x6e   :  { %6151 = vmatmul.mubr.f32.gmra.mrb[4].mxu0 %v8693_v40 }
  0x6f   :  { %6989 = vmatpush3.bf16.msra.mxu0 %v8692_v39  ;;  %6153 = vmatprep.mubr.f32.mxu0 %v8694_v20 }
  0x70   :  { %6991 = vmatprep.subr.bf16.mxu0 %v8695_v54 }
  0x72   :  { %6154 = vmatmul.mubr.f32.gmra.mrb[6].mxu0 %v7932_v46  ;;  %v31_v46 = vld [vmem:[%s8624_s1 + $0xa0] sm:$0xff] }
  0x73   :  { %6993 = vmatpush3.bf16.msra.mxu0 %v8695_v54  ;;  %6188 = vmatprep.mubr.f32.mxu0 %v8696_v55 }
  0x74   :  { %6995 = vmatprep.subr.bf16.mxu0 %v8697_v63 }
  0x77   :  { %6997 = vmatpush3.bf16.msra.mxu0 %v8697_v63 }
  0x78   :  { %6999 = vmatprep.subr.bf16.mxu0 %v8698_v62 }
  0x7b   :  { %7001 = vmatpush3.bf16.msra.mxu0 %v8698_v62 }
  0x7c   :  { %7003 = vmatprep.subr.bf16.mxu0 %v8699_v18 }
  0x7f   :  { %7005 = vmatpush3.bf16.msra.mxu0 %v8699_v18 }
  0x80   :  { %7007 = vmatprep.subr.bf16.mxu0 %v8700_v5 }
  0x83   :  { %7009 = vmatpush3.bf16.msra.mxu0 %v8700_v5 }
  0x84   :  { %7011 = vmatprep.subr.bf16.mxu0 %v8701_v6 }
  0x86   :  { %6189 = vmatmul.mubr.f32.vlgmr.msra.gmra.mrb[0].mxu0 %v8702_v23 }
  0x87   :  { %7013 = vmatpush3.bf16.msra.mxu0 %v8701_v6  ;;  %6191 = vmatprep.mubr.f32.mxu0 %v8703_v51 }
  0x88   :  { %7015 = vmatprep.subr.bf16.mxu0 %v8704_v28 }
  0x8a   :  { %6192 = vmatmul.mubr.f32.gmra.mrb[2].mxu0 %v8705_v1 }
  0x8b   :  { %7017 = vmatpush3.bf16.msra.mxu0 %v8704_v28  ;;  %6194 = vmatprep.mubr.f32.mxu0 %v8706_v59 }
  0x8c   :  { %7019 = vmatprep.subr.bf16.mxu0 %v8707_v14 }
  0x8e   :  { %6195 = vmatmul.mubr.f32.gmra.mrb[4].mxu0 %v8708_v47 }
  0x8f   :  { %7021 = vmatpush3.bf16.msra.mxu0 %v8707_v14  ;;  %6197 = vmatprep.mubr.f32.mxu0 %v8709_v16 }
  0x90   :  { %7023 = vmatprep.subr.bf16.mxu0 %v7990_v15 }
  0x92   :  { %6198 = vmatmul.mubr.f32.gmra.mrb[6].mxu0 %v8710_v24 }
  0x93   :  { %7025 = vmatpush3.bf16.msra.mxu0 %v7990_v15  ;;  %6232 = vmatprep.mubr.f32.mxu0 %v7662_v17 }
  0x94   :  { %7027 = vmatprep.subr.bf16.mxu0 %v8711_v2 }
  0x97   :  { %7029 = vmatpush3.bf16.msra.mxu0 %v8711_v2 }
  0x98   :  { %7031 = vmatprep.subr.bf16.mxu0 %v8712_v11 }
  0x9b   :  { %7033 = vmatpush3.bf16.msra.mxu0 %v8712_v11 }
  0x9c   :  { %7035 = vmatprep.subr.bf16.mxu0 %v8713_v57 }
  0x9f   :  { %7037 = vmatpush3.bf16.msra.mxu0 %v8713_v57 }
  0xa0   :  { %7039 = vmatprep.subr.bf16.mxu0 %v8714_v21 }
  0xa3   :  { %7041 = vmatpush3.bf16.msra.mxu0 %v8714_v21 }
  0xa4   :  { %7043 = vmatprep.subr.bf16.mxu0 %v7643_v10 }
  0xa6   :  { %6233 = vmatmul.mubr.f32.vlgmr.msra.gmra.mrb[0].mxu0 %v7703_v32 }
  0xa7   :  { %7045 = vmatpush3.bf16.msra.mxu0 %v7643_v10  ;;  %6235 = vmatprep.mubr.f32.mxu0 %v7773_v60 }
  0xa8   :  { %7047 = vmatprep.subr.bf16.mxu0 %v7645_v13 }
  0xaa   :  { %6236 = vmatmul.mubr.f32.gmra.mrb[2].mxu0 %v7796_v4 }
  0xab   :  { %7049 = vmatpush3.bf16.msra.mxu0 %v7645_v13  ;;  %6238 = vmatprep.mubr.f32.mxu0 %v7832_v35 }
  0xac   :  { %7051 = vmatprep.subr.bf16.mxu0 %v8692_v39 }
  0xae   :  { %6239 = vmatmul.mubr.f32.gmra.mrb[4].mxu0 %v7854_v3 }
  0xaf   :  { %7053 = vmatpush3.bf16.msra.mxu0 %v8692_v39  ;;  %6241 = vmatprep.mubr.f32.mxu0 %v7860_v30 }
  0xb0   :  { %7055 = vmatprep.subr.bf16.mxu0 %v8695_v54 }
  0xb2   :  { %6242 = vmatmul.mubr.f32.gmra.mrb[6].mxu0 %v7899_v49 }
  0xb3   :  { %7057 = vmatpush3.bf16.msra.mxu0 %v8695_v54  ;;  %6276 = vmatprep.mubr.f32.mxu0 %v7662_v17 }
  0xb4   :  { %7059 = vmatprep.subr.bf16.mxu0 %v8697_v63 }
  0xb7   :  { %7061 = vmatpush3.bf16.msra.mxu0 %v8697_v63  ;;  %v32_v63 = vld [vmem:[%s8624_s1 + $0xa8] sm:$0xff] }
  0xb8   :  { %7063 = vmatprep.subr.bf16.mxu0 %v8698_v62 }
  0xbb   :  { %7065 = vmatpush3.bf16.msra.mxu0 %v8698_v62 }
  0xbc   :  { %7067 = vmatprep.subr.bf16.mxu0 %v8699_v18 }
  0xbf   :  { %7069 = vmatpush3.bf16.msra.mxu0 %v8699_v18 }
  0xc0   :  { %7071 = vmatprep.subr.bf16.mxu0 %v8700_v5 }
  0xc3   :  { %7073 = vmatpush3.bf16.msra.mxu0 %v8700_v5 }
  0xc4   :  { %7074 = vmatprep.subr.bf16.mxu0 %v8690_v29 }
  0xc6   :  { %6277 = vmatmul.mubr.f32.vlgmr.msra.gmra.mrb[0].mxu0 %v7703_v32 }
  0xc7   :  { %7076 = vmatpush3.bf16.msra.mxu0 %v8046_v27  ;;  %6279 = vmatprep.mubr.f32.mxu0 %v7773_v60 }
  0xc8   :  { %7077 = vmatprep.subr.bf16.mxu0 %v8690_v29 }
  0xca   :  { %6280 = vmatmul.mubr.f32.gmra.mrb[2].mxu0 %v7796_v4 }
  0xcb   :  { %6282 = vmatprep.mubr.f32.mxu0 %v7832_v35  ;;  %7079 = vmatpush3.bf16.msra.mxu0 %v8051_v42 }
  0xcc   :  { %7080 = vmatprep.subr.bf16.mxu0 %v8690_v29 }
  0xce   :  { %6283 = vmatmul.mubr.f32.gmra.mrb[4].mxu0 %v7854_v3 }
  0xcf   :  { %6285 = vmatprep.mubr.f32.mxu0 %v7860_v30 }
  0xd2   :  { %6286 = vmatmul.mubr.f32.gmra.mrb[6].mxu0 %v7899_v49 }
  0xd3   :  { %6296 = vmatprep.mubr.msk.f32.mxu0 %vm7605_vm0, %v7606_v53 }
  0xd6   :  { %6297 = vmatmul.mubr.f32.vlgmr.msra.gmra.mrb[8].mxu0 %v7606_v53 }
  0xd7   :  { %7082 = vmatpush3.bf16.msra.mxu0 %v8108_v12  ;;  %6307 = vmatprep.mubr.msk.f32.mxu0 %vm7605_vm0, %v7606_v53 }
  0xd8   :  { %7083 = vmatprep.subr.bf16.mxu0 %v8690_v29 }
  0xdb   :  { %7085 = vmatpush3.bf16.msra.mxu0 %v8116_v7 }
  0xdc   :  { %7254 = vmatprep.subr.bf16.mxu0 %v8690_v29 }
  0xde   :  { %6308 = vmatmul.mubr.f32.vlgmr.msra.gmra.mrb[8].mxu0 %v7606_v53 }
  0xdf   :  { %7256 = vmatpush3.bf16.msra.mxu0 %v8046_v27  ;;  %6626 = vmatprep.mubr.msk.f32.mxu0 %vm7605_vm0, %v7606_v53 }
  0xe0   :  { %7257 = vmatprep.subr.bf16.mxu0 %v8690_v29 }
  0xe3   :  { %7259 = vmatpush3.bf16.msra.mxu0 %v8051_v42 }
  0xe4   :  { %7260 = vmatprep.subr.bf16.mxu0 %v8690_v29 }
 0x120   :  { %v1479_v10 = vpop.f32.mrb[0].mxu1 }
 0x121   :  { %v6353_v13 = vpop.f32.mrb[1].mxu1 }
 0x199   :  { %v8228_v17 = vpop.f32.mrb[0].mxu0 }
 0x19a   :  { %v948_v32 = vpop.f32.mrb[1].mxu0  ;;  %v7398_v62 = vadd.f32 %v8228_v17, %v32_v63 }
 0x19b   :  { %v7399_v0 = vadd.f32 %v948_v32, %v31_v46 }
 0x19d   :  { %v8230_v60 = vpop.f32.mrb[2].mxu0 }
 0x19e   :  { %v8232_v4 = vpop.f32.mrb[3].mxu0 }
 0x1a1   :  { %v8234_v35 = vpop.f32.mrb[4].mxu0 }
 0x1a2   :  { %v8236_v3 = vpop.f32.mrb[5].mxu0 }
 0x1a5   :  { %v8238_v30 = vpop.f32.mrb[6].mxu0 }
 0x1a6   :  { %v8240_v49 = vpop.f32.mrb[7].mxu0 }
 0x1b1   :  { %v1164_v15 = vpop.f32.mrb[8].mxu0 }
 0x1b2   :  { %v7406_v48 = vadd.f32 %v1479_v10, %v1164_v15  ;;  %v6309_v8 = vpop.f32.mrb[9].mxu0 }
 0x1b4   :  { %v1483_v50 = vadd.f32 %v7406_v48, %v7399_v0  ;;  %v33_v48 = vld [vmem:[%s8624_s1 + $0xb0] sm:$0xff] }
 0x1b5   :  { %v7401_v8 = vadd.f32 %v8232_v4, %v33_v48  ;;  %v35_v48 = vld [vmem:[%s8624_s1 + $0xc0] sm:$0xff] }
 0x1b6   :  { %7542 = vtanh.f32 %v1483_v50  ;;  %v5602_v25 = vmul.f32 -1.442695, %v1483_v50 }
 0x1b8   :  { %7544 = vpow2.f32 %v5602_v25 }
 0x1c0   :  { %v7543_v58 = vpop.eup %7542 }
 0x1c1   :  { %1493 = vrot.lane.b32.xlu0 %v7543_v58, %s7607_s10 }
 0x1c2   :  { %v7545_v26 = vpop.eup %7544 }
 0x1c3   :  { %v1487_v33 = vadd.f32 1.0, %v7545_v26 }
 0x1c5   :  { %7546 = vrcp.f32 %v1487_v33 }
 0x1cf   :  { %v7547_v36 = vpop.eup %7546 }
 0x1d0   :  { %v1491_v9 = vmul.f32 0.0, %v7547_v36 }
 0x233   :  { %v1494_v37 = vpop.permute.xlu0 %1493 }
 0x234   :  { %v1496_v38 = vmul.f32 %v7547_v36, %v1494_v37 }
 0x236   :  { %1498 = vrot.lane.b32.xlu0 %v1496_v38, %s7608_s11 }
 0x2a8   :  { %v1499_v43 = vpop.permute.xlu0 %1498 }
 0x2a9   :  { %v8247_v19 = vadd.f32 %v1499_v43, %v1491_v9 }
 0x2ab   :  { %7548 = vtanh.f32 %v8247_v19 }
 0x2b5   :  { %v7549_v56 = vpop.eup %7548 }
 0x2b6   :  { %1504 = vrot.lane.b32.xlu1 %v7549_v56, %s7607_s10 }
 0x328   :  { %v1505_v31 = vpop.permute.xlu1 %1504 }
 0x329   :  { %v1507_v41 = vmul.f32 %v7547_v36, %v1505_v31 }
 0x32b   :  { %1509 = vrot.lane.b32.xlu1 %v1507_v41, %s7608_s11 }
 0x39d   :  { %v1510_v44 = vpop.permute.xlu1 %1509 }
 0x39e   :  { %v1511_v52 = vsel %vm994_vm1, %v1510_v44, 0 }
 0x39f   :  { %v1582_v39 = vand.u32 4294901760, %v1511_v52 }
 0x3a1   :  { %v1583_v40 = vsub.f32 %v1511_v52, %v1582_v39 }
 0x3a3   :  { %v1584_v20 = vand.u32 4294901760, %v1583_v40 }
 0x3a5   :  { %v1585_v54 = vsub.f32 %v1583_v40, %v1584_v20 }
 0x3a7   :  { %v1586_v55 = vand.u32 4294901760, %v1585_v54 }
 0x3a9   :  { %6363 = vmatmul.mubr.f32.vlgmr.msra.gmra.mrb[2].mxu1 %v1586_v55 }
 0x3aa   :  { %7118 = vmatpush3.bf16.msra.mxu1 %v8108_v12  ;;  %6373 = vmatprep.mubr.msk.f32.mxu1 %vm7605_vm0, %v7606_v53 }
 0x3ab   :  { %7119 = vmatprep.subr.bf16.mxu1 %v8690_v29 }
 0x3ae   :  { %7121 = vmatpush3.bf16.msra.mxu1 %v8116_v7 }
 0x3af   :  { %7122 = vmatprep.subr.bf16.mxu1 %v8690_v29 }
 0x3b1   :  { %6374 = vmatmul.mubr.f32.vlgmr.msra.gmra.mrb[2].mxu1 %v1582_v39 }
 0x3b2   :  { %7124 = vmatpush3.bf16.msra.mxu1 %v8028_v34  ;;  %6384 = vmatprep.mubr.msk.f32.mxu1 %vm7605_vm0, %v7606_v53 }
 0x3b3   :  { %7125 = vmatprep.subr.bf16.mxu1 %v8690_v29 }
 0x3b6   :  { %7127 = vmatpush3.bf16.msra.mxu1 %v8038_v61 }
 0x3b7   :  { %7128 = vmatprep.subr.bf16.mxu1 %v8690_v29 }
 0x3b9   :  { %6385 = vmatmul.mubr.f32.vlgmr.msra.gmra.mrb[2].mxu1 %v1583_v40 }
 0x3ba   :  { %7130 = vmatpush3.bf16.msra.mxu1 %v8046_v27  ;;  %6395 = vmatprep.mubr.msk.f32.mxu1 %vm7605_vm0, %v7606_v53 }
 0x3bb   :  { %7131 = vmatprep.subr.bf16.mxu1 %v8690_v29 }
 0x3be   :  { %7133 = vmatpush3.bf16.msra.mxu1 %v8051_v42 }
 0x3bf   :  { %7134 = vmatprep.subr.bf16.mxu1 %v8690_v29 }
 0x3c1   :  { %6396 = vmatmul.mubr.f32.vlgmr.msra.gmra.mrb[2].mxu1 %v1584_v20 }
 0x3c2   :  { %7136 = vmatpush3.bf16.msra.mxu1 %v8060_v45  ;;  %6406 = vmatprep.mubr.msk.f32.mxu1 %vm7605_vm0, %v7606_v53 }
 0x3c3   :  { %7137 = vmatprep.subr.bf16.mxu1 %v8690_v29 }
 0x3c6   :  { %7139 = vmatpush3.bf16.msra.mxu1 %v8069_v22 }
 0x3c7   :  { %7140 = vmatprep.subr.bf16.mxu1 %v8690_v29 }
 0x3c9   :  { %6407 = vmatmul.mubr.f32.vlgmr.msra.gmra.mrb[2].mxu1 %v1582_v39 }
 0x3ca   :  { %7142 = vmatpush3.bf16.msra.mxu1 %v8046_v27  ;;  %6417 = vmatprep.mubr.msk.f32.mxu1 %vm7605_vm0, %v7606_v53 }
 0x3cb   :  { %7143 = vmatprep.subr.bf16.mxu1 %v8690_v29 }
 0x3ce   :  { %7145 = vmatpush3.bf16.msra.mxu1 %v8051_v42 }
 0x3cf   :  { %7146 = vmatprep.subr.bf16.mxu1 %v8690_v29 }
 0x3d1   :  { %6418 = vmatmul.mubr.f32.vlgmr.msra.gmra.mrb[2].mxu1 %v1582_v39 }
 0x3d2   :  { %7148 = vmatpush3.bf16.msra.mxu1 %v8046_v27  ;;  %6428 = vmatprep.mubr.msk.f32.mxu1 %vm7605_vm0, %v7606_v53 }
 0x3d3   :  { %7149 = vmatprep.subr.bf16.mxu1 %v8690_v29 }
 0x3d6   :  { %7151 = vmatpush3.bf16.msra.mxu1 %v8051_v42 }
 0x3d7   :  { %7152 = vmatprep.subr.bf16.mxu1 %v8690_v29 }
 0x4a4   :  { %v1994_v18 = vpop.f32.mrb[2].mxu1 }
 0x4a5   :  { %v1998_v5 = vadd.f32 %v7398_v62, %v1994_v18  ;;  %v6419_v6 = vpop.f32.mrb[3].mxu1  ;;  %v34_v62 = vld [vmem:[%s8624_s1 + $0xb8] sm:$0xff] }
 0x4a6   :  { %v7400_v18 = vadd.f32 %v8230_v60, %v34_v62 }
 0x4a7   :  { %7550 = vtanh.f32 %v1998_v5  ;;  %v5603_v51 = vmul.f32 -1.442695, %v1998_v5 }
 0x4a9   :  { %7552 = vpow2.f32 %v5603_v51 }
 0x4b1   :  { %v7551_v23 = vpop.eup %7550 }
 0x4b2   :  { %2008 = vrot.lane.b32.xlu0 %v7551_v23, %s7607_s10 }
 0x4b3   :  { %v7553_v28 = vpop.eup %7552 }
 0x4b4   :  { %v2002_v1 = vadd.f32 1.0, %v7553_v28 }
 0x4b6   :  { %7554 = vrcp.f32 %v2002_v1 }
 0x4c0   :  { %v7555_v59 = vpop.eup %7554 }
 0x4c1   :  { %v2006_v16 = vmul.f32 %v7555_v59, %v8247_v19 }
 0x524   :  { %v2009_v14 = vpop.permute.xlu0 %2008 }
 0x525   :  { %v2011_v47 = vmul.f32 %v7555_v59, %v2009_v14 }
 0x527   :  { %2013 = vrot.lane.b32.xlu1 %v2011_v47, %s7608_s11 }
 0x599   :  { %v2014_v24 = vpop.permute.xlu1 %2013 }
 0x59a   :  { %v8296_v2 = vadd.f32 %v2014_v24, %v2006_v16 }
 0x59c   :  { %7556 = vtanh.f32 %v8296_v2 }
 0x5a6   :  { %v7557_v11 = vpop.eup %7556 }
 0x5a7   :  { %2019 = vrot.lane.b32.xlu0 %v7557_v11, %s7607_s10 }
 0x619   :  { %v2020_v57 = vpop.permute.xlu0 %2019 }
 0x61a   :  { %v2022_v21 = vmul.f32 %v7555_v59, %v2020_v57 }
 0x61c   :  { %2024 = vrot.lane.b32.xlu1 %v2022_v21, %s7608_s11 }
 0x68e   :  { %v2025_v10 = vpop.permute.xlu1 %2024 }
 0x68f   :  { %v2026_v13 = vsel %vm994_vm1, %v2025_v10, 0 }
 0x690   :  { %v2097_v17 = vand.u32 4294901760, %v2026_v13 }
 0x692   :  { %v2098_v32 = vsub.f32 %v2026_v13, %v2097_v17 }
 0x694   :  { %v2099_v46 = vand.u32 4294901760, %v2098_v32 }
 0x696   :  { %v2100_v15 = vsub.f32 %v2098_v32, %v2099_v46 }
 0x698   :  { %v2101_v0 = vand.u32 4294901760, %v2100_v15 }
 0x69a   :  { %6429 = vmatmul.mubr.f32.vlgmr.msra.gmra.mrb[4].mxu1 %v2101_v0 }
 0x69b   :  { %7154 = vmatpush3.bf16.msra.mxu1 %v8108_v12  ;;  %6439 = vmatprep.mubr.msk.f32.mxu1 %vm7605_vm0, %v7606_v53 }
 0x69c   :  { %7155 = vmatprep.subr.bf16.mxu1 %v8690_v29 }
 0x69f   :  { %7157 = vmatpush3.bf16.msra.mxu1 %v8116_v7 }
 0x6a0   :  { %7158 = vmatprep.subr.bf16.mxu1 %v8690_v29 }
 0x6a2   :  { %6440 = vmatmul.mubr.f32.vlgmr.msra.gmra.mrb[4].mxu1 %v2097_v17 }
 0x6a3   :  { %7160 = vmatpush3.bf16.msra.mxu1 %v8028_v34  ;;  %6450 = vmatprep.mubr.msk.f32.mxu1 %vm7605_vm0, %v7606_v53 }
 0x6a4   :  { %7161 = vmatprep.subr.bf16.mxu1 %v8690_v29 }
 0x6a7   :  { %7163 = vmatpush3.bf16.msra.mxu1 %v8038_v61 }
 0x6a8   :  { %7164 = vmatprep.subr.bf16.mxu1 %v8690_v29 }
 0x6aa   :  { %6451 = vmatmul.mubr.f32.vlgmr.msra.gmra.mrb[4].mxu1 %v2098_v32 }
 0x6ab   :  { %7166 = vmatpush3.bf16.msra.mxu1 %v8046_v27  ;;  %6461 = vmatprep.mubr.msk.f32.mxu1 %vm7605_vm0, %v7606_v53 }
 0x6ac   :  { %7167 = vmatprep.subr.bf16.mxu1 %v8690_v29 }
 0x6af   :  { %7169 = vmatpush3.bf16.msra.mxu1 %v8051_v42 }
 0x6b0   :  { %7170 = vmatprep.subr.bf16.mxu1 %v8690_v29 }
 0x6b2   :  { %6462 = vmatmul.mubr.f32.vlgmr.msra.gmra.mrb[4].mxu1 %v2099_v46 }
 0x6b3   :  { %7172 = vmatpush3.bf16.msra.mxu1 %v8060_v45  ;;  %6472 = vmatprep.mubr.msk.f32.mxu1 %vm7605_vm0, %v7606_v53 }
 0x6b4   :  { %7173 = vmatprep.subr.bf16.mxu1 %v8690_v29 }
 0x6b7   :  { %7175 = vmatpush3.bf16.msra.mxu1 %v8069_v22 }
 0x6b8   :  { %7176 = vmatprep.subr.bf16.mxu1 %v8690_v29 }
 0x6ba   :  { %6473 = vmatmul.mubr.f32.vlgmr.msra.gmra.mrb[4].mxu1 %v2097_v17 }
 0x6bb   :  { %7178 = vmatpush3.bf16.msra.mxu1 %v8046_v27  ;;  %6483 = vmatprep.mubr.msk.f32.mxu1 %vm7605_vm0, %v7606_v53 }
 0x6bc   :  { %7179 = vmatprep.subr.bf16.mxu1 %v8690_v29 }
 0x6bf   :  { %7181 = vmatpush3.bf16.msra.mxu1 %v8051_v42 }
 0x6c0   :  { %7182 = vmatprep.subr.bf16.mxu1 %v8690_v29 }
 0x6c2   :  { %6484 = vmatmul.mubr.f32.vlgmr.msra.gmra.mrb[4].mxu1 %v2097_v17 }
 0x6c3   :  { %7184 = vmatpush3.bf16.msra.mxu1 %v8046_v27  ;;  %6494 = vmatprep.mubr.msk.f32.mxu1 %vm7605_vm0, %v7606_v53 }
 0x6c4   :  { %7185 = vmatprep.subr.bf16.mxu1 %v8690_v29 }
 0x6c7   :  { %7187 = vmatpush3.bf16.msra.mxu1 %v8051_v42 }
 0x6c8   :  { %7188 = vmatprep.subr.bf16.mxu1 %v8690_v29 }
 0x795   :  { %v2509_v50 = vpop.f32.mrb[4].mxu1 }
 0x796   :  { %v2513_v58 = vadd.f32 %v7401_v8, %v2509_v50  ;;  %v6485_v25 = vpop.f32.mrb[5].mxu1  ;;  %v7403_v8 = vadd.f32 %v8236_v3, %v35_v48 }
 0x798   :  { %7558 = vtanh.f32 %v2513_v58  ;;  %v5604_v33 = vmul.f32 -1.442695, %v2513_v58 }
 0x79a   :  { %7560 = vpow2.f32 %v5604_v33 }
 0x7a2   :  { %v7559_v26 = vpop.eup %7558 }
 0x7a3   :  { %2523 = vrot.lane.b32.xlu0 %v7559_v26, %s7607_s10 }
 0x7a4   :  { %v7561_v36 = vpop.eup %7560 }
 0x7a5   :  { %v2517_v37 = vadd.f32 1.0, %v7561_v36 }
 0x7a7   :  { %7562 = vrcp.f32 %v2517_v37 }
 0x7b1   :  { %v7563_v38 = vpop.eup %7562 }
 0x7b2   :  { %v2521_v19 = vmul.f32 %v7563_v38, %v8296_v2 }
 0x815   :  { %v2524_v9 = vpop.permute.xlu0 %2523 }
 0x816   :  { %v2526_v43 = vmul.f32 %v7563_v38, %v2524_v9 }
 0x818   :  { %2528 = vrot.lane.b32.xlu1 %v2526_v43, %s7608_s11 }
 0x88a   :  { %v2529_v4 = vpop.permute.xlu1 %2528 }
 0x88b   :  { %v8345_v56 = vadd.f32 %v2529_v4, %v2521_v19 }
 0x88d   :  { %7564 = vtanh.f32 %v8345_v56 }
 0x897   :  { %v7565_v31 = vpop.eup %7564 }
 0x898   :  { %2534 = vrot.lane.b32.xlu0 %v7565_v31, %s7607_s10 }
 0x90a   :  { %v2535_v41 = vpop.permute.xlu0 %2534 }
 0x90b   :  { %v2537_v44 = vmul.f32 %v7563_v38, %v2535_v41 }
 0x90d   :  { %2539 = vrot.lane.b32.xlu1 %v2537_v44, %s7608_s11 }
 0x97f   :  { %v2540_v52 = vpop.permute.xlu1 %2539 }
 0x980   :  { %v2541_v39 = vsel %vm994_vm1, %v2540_v52, 0 }
 0x981   :  { %v2612_v40 = vand.u32 4294901760, %v2541_v39 }
 0x983   :  { %v2613_v20 = vsub.f32 %v2541_v39, %v2612_v40 }
 0x985   :  { %v2614_v54 = vand.u32 4294901760, %v2613_v20 }
 0x987   :  { %v2615_v55 = vsub.f32 %v2613_v20, %v2614_v54 }
 0x989   :  { %v2616_v63 = vand.u32 4294901760, %v2615_v55 }
 0x98b   :  { %6495 = vmatmul.mubr.f32.vlgmr.msra.gmra.mrb[6].mxu1 %v2616_v63  ;;  %v36_v63 = vld [vmem:[%s8624_s1 + $0xc8] sm:$0xff] }
 0x98c   :  { %7190 = vmatpush3.bf16.msra.mxu1 %v8108_v12  ;;  %6505 = vmatprep.mubr.msk.f32.mxu1 %vm7605_vm0, %v7606_v53  ;;  %v7402_v62 = vadd.f32 %v8234_v35, %v36_v63 }
 0x98d   :  { %7191 = vmatprep.subr.bf16.mxu1 %v8690_v29 }
 0x990   :  { %7193 = vmatpush3.bf16.msra.mxu1 %v8116_v7 }
 0x991   :  { %7194 = vmatprep.subr.bf16.mxu1 %v8690_v29 }
 0x993   :  { %6506 = vmatmul.mubr.f32.vlgmr.msra.gmra.mrb[6].mxu1 %v2612_v40 }
 0x994   :  { %7196 = vmatpush3.bf16.msra.mxu1 %v8028_v34  ;;  %6516 = vmatprep.mubr.msk.f32.mxu1 %vm7605_vm0, %v7606_v53 }
 0x995   :  { %7197 = vmatprep.subr.bf16.mxu1 %v8690_v29 }
 0x998   :  { %7199 = vmatpush3.bf16.msra.mxu1 %v8038_v61 }
 0x999   :  { %7200 = vmatprep.subr.bf16.mxu1 %v8690_v29 }
 0x99b   :  { %6517 = vmatmul.mubr.f32.vlgmr.msra.gmra.mrb[6].mxu1 %v2613_v20 }
 0x99c   :  { %7202 = vmatpush3.bf16.msra.mxu1 %v8046_v27  ;;  %6527 = vmatprep.mubr.msk.f32.mxu1 %vm7605_vm0, %v7606_v53 }
 0x99d   :  { %7203 = vmatprep.subr.bf16.mxu1 %v8690_v29 }
 0x9a0   :  { %7205 = vmatpush3.bf16.msra.mxu1 %v8051_v42 }
 0x9a1   :  { %7206 = vmatprep.subr.bf16.mxu1 %v8690_v29 }
 0x9a3   :  { %6528 = vmatmul.mubr.f32.vlgmr.msra.gmra.mrb[6].mxu1 %v2614_v54 }
 0x9a4   :  { %7208 = vmatpush3.bf16.msra.mxu1 %v8060_v45  ;;  %6538 = vmatprep.mubr.msk.f32.mxu1 %vm7605_vm0, %v7606_v53 }
 0x9a5   :  { %7209 = vmatprep.subr.bf16.mxu1 %v8690_v29 }
 0x9a8   :  { %7211 = vmatpush3.bf16.msra.mxu1 %v8069_v22 }
 0x9a9   :  { %7212 = vmatprep.subr.bf16.mxu1 %v8690_v29 }
 0x9ab   :  { %6539 = vmatmul.mubr.f32.vlgmr.msra.gmra.mrb[6].mxu1 %v2612_v40 }
 0x9ac   :  { %7214 = vmatpush3.bf16.msra.mxu1 %v8046_v27  ;;  %6549 = vmatprep.mubr.msk.f32.mxu1 %vm7605_vm0, %v7606_v53 }
 0x9ad   :  { %7215 = vmatprep.subr.bf16.mxu1 %v8690_v29 }
 0x9b0   :  { %7217 = vmatpush3.bf16.msra.mxu1 %v8051_v42 }
 0x9b1   :  { %7218 = vmatprep.subr.bf16.mxu1 %v8690_v29 }
 0x9b3   :  { %6550 = vmatmul.mubr.f32.vlgmr.msra.gmra.mrb[6].mxu1 %v2612_v40 }
 0x9b4   :  { %7220 = vmatpush3.bf16.msra.mxu1 %v8046_v27  ;;  %6560 = vmatprep.mubr.msk.f32.mxu1 %vm7605_vm0, %v7606_v53 }
 0x9b5   :  { %7221 = vmatprep.subr.bf16.mxu1 %v8690_v29 }
 0x9b8   :  { %7223 = vmatpush3.bf16.msra.mxu1 %v8051_v42 }
 0x9b9   :  { %7224 = vmatprep.subr.bf16.mxu1 %v8690_v29 }
 0xa86   :  { %v3024_v5 = vpop.f32.mrb[6].mxu1 }
 0xa87   :  { %v3028_v6 = vadd.f32 %v7400_v18, %v3024_v5  ;;  %v6551_v23 = vpop.f32.mrb[7].mxu1 }
 0xa89   :  { %7566 = vtanh.f32 %v3028_v6  ;;  %v5605_v28 = vmul.f32 -1.442695, %v3028_v6 }
 0xa8b   :  { %7568 = vpow2.f32 %v5605_v28 }
 0xa93   :  { %v7567_v51 = vpop.eup %7566 }
 0xa94   :  { %3038 = vrot.lane.b32.xlu0 %v7567_v51, %s7607_s10 }
 0xa95   :  { %v7569_v1 = vpop.eup %7568 }
 0xa96   :  { %v3032_v59 = vadd.f32 1.0, %v7569_v1 }
 0xa98   :  { %7570 = vrcp.f32 %v3032_v59 }
 0xaa2   :  { %v7571_v14 = vpop.eup %7570 }
 0xaa3   :  { %v3036_v24 = vmul.f32 %v7571_v14, %v8345_v56 }
 0xb06   :  { %v3039_v47 = vpop.permute.xlu0 %3038 }
 0xb07   :  { %v3041_v16 = vmul.f32 %v7571_v14, %v3039_v47 }
 0xb09   :  { %3043 = vrot.lane.b32.xlu1 %v3041_v16, %s7608_s11 }
 0xb7b   :  { %v3044_v60 = vpop.permute.xlu1 %3043 }
 0xb7c   :  { %v8394_v2 = vadd.f32 %v3044_v60, %v3036_v24 }
 0xb7e   :  { %7572 = vtanh.f32 %v8394_v2 }
 0xb88   :  { %v7573_v11 = vpop.eup %7572 }
 0xb89   :  { %3049 = vrot.lane.b32.xlu0 %v7573_v11, %s7607_s10 }
 0xbfb   :  { %v3050_v57 = vpop.permute.xlu0 %3049 }
 0xbfc   :  { %v3052_v21 = vmul.f32 %v7571_v14, %v3050_v57 }
 0xbfe   :  { %3054 = vrot.lane.b32.xlu1 %v3052_v21, %s7608_s11 }
 0xc70   :  { %v3055_v10 = vpop.permute.xlu1 %3054 }
 0xc71   :  { %v3056_v13 = vsel %vm994_vm1, %v3055_v10, 0 }
 0xc72   :  { %v3127_v17 = vand.u32 4294901760, %v3056_v13 }
 0xc74   :  { %v3128_v32 = vsub.f32 %v3056_v13, %v3127_v17 }
 0xc76   :  { %v3129_v46 = vand.u32 4294901760, %v3128_v32 }
 0xc78   :  { %v3130_v15 = vsub.f32 %v3128_v32, %v3129_v46 }
 0xc7a   :  { %v3131_v0 = vand.u32 4294901760, %v3130_v15  ;;  %v37_v15 = vld [vmem:[%s8624_s1 + $0xd0] sm:$0xff] }
 0xc7c   :  { %6561 = vmatmul.mubr.f32.vlgmr.msra.gmra.mrb[8].mxu1 %v3131_v0  ;;  %v7405_v0 = vadd.f32 %v8240_v49, %v37_v15 }
 0xc7d   :  { %7226 = vmatpush3.bf16.msra.mxu1 %v8108_v12  ;;  %6571 = vmatprep.mubr.msk.f32.mxu1 %vm7605_vm0, %v7606_v53 }
 0xc7e   :  { %7227 = vmatprep.subr.bf16.mxu1 %v8690_v29 }
 0xc81   :  { %7229 = vmatpush3.bf16.msra.mxu1 %v8116_v7 }
 0xc82   :  { %7230 = vmatprep.subr.bf16.mxu1 %v8690_v29 }
 0xc84   :  { %6572 = vmatmul.mubr.f32.vlgmr.msra.gmra.mrb[8].mxu1 %v3127_v17 }
 0xc85   :  { %7232 = vmatpush3.bf16.msra.mxu1 %v8028_v34  ;;  %6582 = vmatprep.mubr.msk.f32.mxu1 %vm7605_vm0, %v7606_v53 }
 0xc86   :  { %7233 = vmatprep.subr.bf16.mxu1 %v8690_v29 }
 0xc89   :  { %7235 = vmatpush3.bf16.msra.mxu1 %v8038_v61 }
 0xc8a   :  { %7236 = vmatprep.subr.bf16.mxu1 %v8690_v29 }
 0xc8c   :  { %6583 = vmatmul.mubr.f32.vlgmr.msra.gmra.mrb[8].mxu1 %v3128_v32 }
 0xc8d   :  { %7238 = vmatpush3.bf16.msra.mxu1 %v8046_v27  ;;  %6593 = vmatprep.mubr.msk.f32.mxu1 %vm7605_vm0, %v7606_v53 }
 0xc8e   :  { %7239 = vmatprep.subr.bf16.mxu1 %v8690_v29 }
 0xc91   :  { %7241 = vmatpush3.bf16.msra.mxu1 %v8051_v42 }
 0xc92   :  { %7242 = vmatprep.subr.bf16.mxu1 %v8690_v29 }
 0xc94   :  { %6594 = vmatmul.mubr.f32.vlgmr.msra.gmra.mrb[8].mxu1 %v3129_v46 }
 0xc95   :  { %7244 = vmatpush3.bf16.msra.mxu1 %v8060_v45  ;;  %6604 = vmatprep.mubr.msk.f32.mxu1 %vm7605_vm0, %v7606_v53 }
 0xc96   :  { %7245 = vmatprep.subr.bf16.mxu1 %v8690_v29 }
 0xc99   :  { %7247 = vmatpush3.bf16.msra.mxu1 %v8069_v22 }
 0xc9a   :  { %7248 = vmatprep.subr.bf16.mxu1 %v8690_v29 }
 0xc9c   :  { %6605 = vmatmul.mubr.f32.vlgmr.msra.gmra.mrb[8].mxu1 %v3127_v17 }
 0xc9d   :  { %7250 = vmatpush3.bf16.msra.mxu1 %v8046_v27  ;;  %6615 = vmatprep.mubr.msk.f32.mxu1 %vm7605_vm0, %v7606_v53 }
 0xc9e   :  { %7251 = vmatprep.subr.bf16.mxu1 %v8690_v29 }
 0xca1   :  { %7253 = vmatpush3.bf16.msra.mxu1 %v8051_v42 }
 0xca2   :  { %7290 = vmatprep.subr.bf16.mxu1 %v8690_v29 }
 0xca4   :  { %6616 = vmatmul.mubr.f32.vlgmr.msra.gmra.mrb[8].mxu1 %v3127_v17 }
 0xca5   :  { %7292 = vmatpush3.bf16.msra.mxu1 %v8046_v27  ;;  %6692 = vmatprep.mubr.msk.f32.mxu1 %vm7605_vm0, %v7606_v53 }
 0xca6   :  { %7293 = vmatprep.subr.bf16.mxu1 %v8690_v29 }
 0xca9   :  { %7295 = vmatpush3.bf16.msra.mxu1 %v8051_v42 }
 0xcaa   :  { %7296 = vmatprep.subr.bf16.mxu1 %v8690_v29 }
 0xd77   :  { %v3539_v50 = vpop.f32.mrb[8].mxu1 }
 0xd78   :  { %v3543_v58 = vadd.f32 %v7403_v8, %v3539_v50  ;;  %v6617_v25 = vpop.f32.mrb[9].mxu1 }
 0xd7a   :  { %7574 = vtanh.f32 %v3543_v58  ;;  %v5606_v33 = vmul.f32 -1.442695, %v3543_v58 }
 0xd7c   :  { %7576 = vpow2.f32 %v5606_v33 }
 0xd84   :  { %v7575_v26 = vpop.eup %7574 }
 0xd85   :  { %3553 = vrot.lane.b32.xlu0 %v7575_v26, %s7607_s10 }
 0xd86   :  { %v7577_v36 = vpop.eup %7576 }
 0xd87   :  { %v3547_v37 = vadd.f32 1.0, %v7577_v36 }
 0xd89   :  { %7578 = vrcp.f32 %v3547_v37 }
 0xd93   :  { %v7579_v38 = vpop.eup %7578 }
 0xd94   :  { %v3551_v19 = vmul.f32 %v7579_v38, %v8394_v2 }
 0xdf7   :  { %v3554_v9 = vpop.permute.xlu0 %3553 }
 0xdf8   :  { %v3556_v43 = vmul.f32 %v7579_v38, %v3554_v9 }
 0xdfa   :  { %3558 = vrot.lane.b32.xlu1 %v3556_v43, %s7608_s11 }
 0xe6c   :  { %v3559_v3 = vpop.permute.xlu1 %3558 }
 0xe6d   :  { %v8443_v4 = vadd.f32 %v3559_v3, %v3551_v19 }
 0xe6f   :  { %7580 = vtanh.f32 %v8443_v4 }
 0xe79   :  { %v7581_v56 = vpop.eup %7580 }
 0xe7a   :  { %3564 = vrot.lane.b32.xlu0 %v7581_v56, %s7607_s10 }
 0xeec   :  { %v3565_v31 = vpop.permute.xlu0 %3564 }
 0xeed   :  { %v3567_v41 = vmul.f32 %v7579_v38, %v3565_v31 }
 0xeef   :  { %3569 = vrot.lane.b32.xlu1 %v3567_v41, %s7608_s11 }
 0xf61   :  { %v3570_v44 = vpop.permute.xlu1 %3569 }
 0xf62   :  { %v3571_v52 = vsel %vm994_vm1, %v3570_v44, 0 }
 0xf63   :  { %v3642_v39 = vand.u32 4294901760, %v3571_v52 }
 0xf65   :  { %v3643_v40 = vsub.f32 %v3571_v52, %v3642_v39 }
 0xf67   :  { %v3644_v20 = vand.u32 4294901760, %v3643_v40 }
 0xf69   :  { %v3645_v54 = vsub.f32 %v3643_v40, %v3644_v20 }
 0xf6b   :  { %v3646_v55 = vand.u32 4294901760, %v3645_v54 }
 0xf6d   :  { %6627 = vmatmul.mubr.f32.vlgmr.msra.gmra.mrb[10].mxu0 %v3646_v55 }
 0xf6e   :  { %7262 = vmatpush3.bf16.msra.mxu0 %v8108_v12  ;;  %6637 = vmatprep.mubr.msk.f32.mxu0 %vm7605_vm0, %v7606_v53 }
 0xf6f   :  { %7263 = vmatprep.subr.bf16.mxu0 %v8690_v29 }
 0xf72   :  { %7265 = vmatpush3.bf16.msra.mxu0 %v8116_v7 }
 0xf73   :  { %7266 = vmatprep.subr.bf16.mxu0 %v8690_v29 }
 0xf75   :  { %6638 = vmatmul.mubr.f32.vlgmr.msra.gmra.mrb[10].mxu0 %v3642_v39 }
 0xf76   :  { %7268 = vmatpush3.bf16.msra.mxu0 %v8028_v34  ;;  %6648 = vmatprep.mubr.msk.f32.mxu0 %vm7605_vm0, %v7606_v53 }
 0xf77   :  { %7269 = vmatprep.subr.bf16.mxu0 %v8690_v29 }
 0xf7a   :  { %7271 = vmatpush3.bf16.msra.mxu0 %v8038_v61 }
 0xf7b   :  { %7272 = vmatprep.subr.bf16.mxu0 %v8690_v29 }
 0xf7d   :  { %6649 = vmatmul.mubr.f32.vlgmr.msra.gmra.mrb[10].mxu0 %v3643_v40 }
 0xf7e   :  { %7274 = vmatpush3.bf16.msra.mxu0 %v8046_v27  ;;  %6659 = vmatprep.mubr.msk.f32.mxu0 %vm7605_vm0, %v7606_v53 }
 0xf7f   :  { %7275 = vmatprep.subr.bf16.mxu0 %v8690_v29 }
 0xf82   :  { %7277 = vmatpush3.bf16.msra.mxu0 %v8051_v42 }
 0xf83   :  { %7278 = vmatprep.subr.bf16.mxu0 %v8690_v29 }
 0xf85   :  { %6660 = vmatmul.mubr.f32.vlgmr.msra.gmra.mrb[10].mxu0 %v3644_v20 }
 0xf86   :  { %7280 = vmatpush3.bf16.msra.mxu0 %v8060_v45  ;;  %6670 = vmatprep.mubr.msk.f32.mxu0 %vm7605_vm0, %v7606_v53 }
 0xf87   :  { %7281 = vmatprep.subr.bf16.mxu0 %v8690_v29 }
 0xf8a   :  { %7283 = vmatpush3.bf16.msra.mxu0 %v8069_v22 }
 0xf8b   :  { %7284 = vmatprep.subr.bf16.mxu0 %v8690_v29 }
 0xf8d   :  { %6671 = vmatmul.mubr.f32.vlgmr.msra.gmra.mrb[10].mxu0 %v3642_v39 }
 0xf8e   :  { %7286 = vmatpush3.bf16.msra.mxu0 %v8046_v27  ;;  %6681 = vmatprep.mubr.msk.f32.mxu0 %vm7605_vm0, %v7606_v53 }
 0xf8f   :  { %7287 = vmatprep.subr.bf16.mxu0 %v8690_v29 }
 0xf92   :  { %7289 = vmatpush3.bf16.msra.mxu0 %v8051_v42 }
 0xf93   :  { %7326 = vmatprep.subr.bf16.mxu0 %v8690_v29 }
 0xf95   :  { %6682 = vmatmul.mubr.f32.vlgmr.msra.gmra.mrb[10].mxu0 %v3642_v39 }
 0xf96   :  { %7328 = vmatpush3.bf16.msra.mxu0 %v8046_v27  ;;  %6758 = vmatprep.mubr.msk.f32.mxu0 %vm7605_vm0, %v7606_v53 }
 0xf97   :  { %7329 = vmatprep.subr.bf16.mxu0 %v8690_v29 }
 0xf9a   :  { %7331 = vmatpush3.bf16.msra.mxu0 %v8051_v42 }
 0xf9b   :  { %7332 = vmatprep.subr.bf16.mxu0 %v8690_v29 }
0x1068   :  { %v4054_v18 = vpop.f32.mrb[10].mxu0 }
0x1069   :  { %v4058_v5 = vadd.f32 %v7402_v62, %v4054_v18  ;;  %v6683_v6 = vpop.f32.mrb[11].mxu0  ;;  %v40_v62 = vld [vmem:[%s8624_s1 + $0xe8] sm:$0xff] }
0x106b   :  { %7582 = vtanh.f32 %v4058_v5  ;;  %v5607_v51 = vmul.f32 -1.442695, %v4058_v5  ;;  %v5116_v5 = vand.u32 4294901760, %v40_v62 }
0x106d   :  { %7584 = vpow2.f32 %v5607_v51  ;;  %v5200_v51 = vsub.f32 %v40_v62, %v5116_v5 }
0x1075   :  { %v7583_v23 = vpop.eup %7582 }
0x1076   :  { %4068 = vrot.lane.b32.xlu0 %v7583_v23, %s7607_s10 }
0x1077   :  { %v7585_v28 = vpop.eup %7584 }
0x1078   :  { %v4062_v1 = vadd.f32 1.0, %v7585_v28  ;;  %v41_v28 = vld [vmem:[%s8624_s1 + $0xf0] sm:$0xff] }
0x107a   :  { %7586 = vrcp.f32 %v4062_v1  ;;  %v42_v1 = vld [vmem:[%s8624_s1 + $0xf8] sm:$0xff] }
0x1084   :  { %v7587_v59 = vpop.eup %7586 }
0x1085   :  { %v4066_v16 = vmul.f32 %v7587_v59, %v8443_v4 }
0x10e8   :  { %v4069_v14 = vpop.permute.xlu0 %4068 }
0x10e9   :  { %v4071_v47 = vmul.f32 %v7587_v59, %v4069_v14  ;;  %v5122_v14 = vand.u32 4294901760, %v42_v1 }
0x10eb   :  { %4073 = vrot.lane.b32.xlu1 %v4071_v47, %s7608_s11 }
0x115d   :  { %v4074_v35 = vpop.permute.xlu1 %4073 }
0x115e   :  { %v8492_v24 = vadd.f32 %v4074_v35, %v4066_v16  ;;  %v5201_v16 = vand.u32 4294901760, %v5200_v51 }
0x1160   :  { %7588 = vtanh.f32 %v8492_v24 }
0x116a   :  { %v7589_v60 = vpop.eup %7588 }
0x116b   :  { %4079 = vrot.lane.b32.xlu0 %v7589_v60, %s7607_s10  ;;  %v5214_v60 = vsub.f32 %v42_v1, %v5122_v14 }
0x11dd   :  { %v4080_v2 = vpop.permute.xlu0 %4079 }
0x11de   :  { %v4082_v11 = vmul.f32 %v7587_v59, %v4080_v2  ;;  %v5119_v59 = vand.u32 4294901760, %v41_v28 }
0x11e0   :  { %4084 = vrot.lane.b32.xlu1 %v4082_v11, %s7608_s11  ;;  %v7366_v35 = vpack.c.bf16 %v5122_v14, %v5119_v59  ;;  %v5202_v11 = vsub.f32 %v5200_v51, %v5201_v16 }
0x1252   :  { %v4085_v57 = vpop.permute.xlu1 %4084 }
0x1253   :  { %v4086_v21 = vsel %vm994_vm1, %v4085_v57, 0 }
0x1254   :  { %v4157_v10 = vand.u32 4294901760, %v4086_v21 }
0x1256   :  { %v4158_v13 = vsub.f32 %v4086_v21, %v4157_v10 }
0x1258   :  { %v4159_v17 = vand.u32 4294901760, %v4158_v13 }
0x125a   :  { %v4160_v32 = vsub.f32 %v4158_v13, %v4159_v17 }
0x125c   :  { %v4161_v46 = vand.u32 4294901760, %v4160_v32 }
0x125e   :  { %6693 = vmatmul.mubr.f32.vlgmr.msra.gmra.mrb[10].mxu1 %v4161_v46 }
0x125f   :  { %7298 = vmatpush3.bf16.msra.mxu1 %v8108_v12  ;;  %6703 = vmatprep.mubr.msk.f32.mxu1 %vm7605_vm0, %v7606_v53 }
0x1260   :  { %7299 = vmatprep.subr.bf16.mxu1 %v8690_v29 }
0x1263   :  { %7301 = vmatpush3.bf16.msra.mxu1 %v8116_v7 }
0x1264   :  { %7302 = vmatprep.subr.bf16.mxu1 %v8690_v29 }
0x1266   :  { %6704 = vmatmul.mubr.f32.vlgmr.msra.gmra.mrb[10].mxu1 %v4157_v10 }
0x1267   :  { %7304 = vmatpush3.bf16.msra.mxu1 %v8028_v34  ;;  %6714 = vmatprep.mubr.msk.f32.mxu1 %vm7605_vm0, %v7606_v53 }
0x1268   :  { %7305 = vmatprep.subr.bf16.mxu1 %v8690_v29 }
0x126b   :  { %7307 = vmatpush3.bf16.msra.mxu1 %v8038_v61 }
0x126c   :  { %7308 = vmatprep.subr.bf16.mxu1 %v8690_v29 }
0x126e   :  { %6715 = vmatmul.mubr.f32.vlgmr.msra.gmra.mrb[10].mxu1 %v4158_v13 }
0x126f   :  { %7310 = vmatpush3.bf16.msra.mxu1 %v8046_v27  ;;  %6725 = vmatprep.mubr.msk.f32.mxu1 %vm7605_vm0, %v7606_v53 }
0x1270   :  { %7311 = vmatprep.subr.bf16.mxu1 %v8690_v29 }
0x1273   :  { %7313 = vmatpush3.bf16.msra.mxu1 %v8051_v42 }
0x1274   :  { %7314 = vmatprep.subr.bf16.mxu1 %v8690_v29 }
0x1276   :  { %6726 = vmatmul.mubr.f32.vlgmr.msra.gmra.mrb[10].mxu1 %v4159_v17  ;;  %v5203_v17 = vand.u32 4294901760, %v5202_v11 }
0x1277   :  { %7316 = vmatpush3.bf16.msra.mxu1 %v8060_v45  ;;  %6736 = vmatprep.mubr.msk.f32.mxu1 %vm7605_vm0, %v7606_v53 }
0x1278   :  { %7317 = vmatprep.subr.bf16.mxu1 %v8690_v29 }
0x127b   :  { %7319 = vmatpush3.bf16.msra.mxu1 %v8069_v22 }
0x127c   :  { %7320 = vmatprep.subr.bf16.mxu1 %v8690_v29 }
0x127e   :  { %6737 = vmatmul.mubr.f32.vlgmr.msra.gmra.mrb[10].mxu1 %v4157_v10 }
0x127f   :  { %7322 = vmatpush3.bf16.msra.mxu1 %v8046_v27  ;;  %6747 = vmatprep.mubr.msk.f32.mxu1 %vm7605_vm0, %v7606_v53 }
0x1280   :  { %7323 = vmatprep.subr.bf16.mxu1 %v8690_v29 }
0x1283   :  { %7325 = vmatpush3.bf16.msra.mxu1 %v8051_v42 }
0x1284   :  { %7362 = vmatprep.subr.bf16.mxu1 %v8690_v29 }
0x1286   :  { %6748 = vmatmul.mubr.f32.vlgmr.msra.gmra.mrb[10].mxu1 %v4157_v10  ;;  %v5215_v10 = vand.u32 4294901760, %v5214_v60 }
0x1287   :  { %6824 = vmatprep.mubr.msk.f32.mxu1 %vm7605_vm0, %v7606_v53 }
0x1288   :  { %v5216_v15 = vsub.f32 %v5214_v60, %v5215_v10 }
0x1359   :  { %v4569_v48 = vpop.f32.mrb[10].mxu1 }
0x135a   :  { %v4573_v8 = vadd.f32 %v7405_v0, %v4569_v48  ;;  %v6749_v50 = vpop.f32.mrb[11].mxu1 }
0x135b   :  { %v5217_v50 = vand.u32 4294901760, %v5216_v15 }
0x135c   :  { %7590 = vtanh.f32 %v4573_v8  ;;  %v5608_v25 = vmul.f32 -1.442695, %v4573_v8 }
0x135e   :  { %7592 = vpow2.f32 %v5608_v25 }
0x1366   :  { %v7591_v58 = vpop.eup %7590 }
0x1367   :  { %4583 = vrot.lane.b32.xlu0 %v7591_v58, %s7607_s10 }
0x1368   :  { %v7593_v26 = vpop.eup %7592 }
0x1369   :  { %v4577_v33 = vadd.f32 1.0, %v7593_v26 }
0x136b   :  { %7594 = vrcp.f32 %v4577_v33 }
0x1375   :  { %v7595_v36 = vpop.eup %7594 }
0x1376   :  { %v4581_v9 = vmul.f32 %v7595_v36, %v8492_v24  ;;  %v5207_v24 = vsub.f32 %v41_v28, %v5119_v59 }
0x1378   :  { %v5208_v21 = vand.u32 4294901760, %v5207_v24  ;;  %v7378_v26 = vpack.c.bf16 %v5214_v60, %v5207_v24 }
0x137a   :  { %v5209_v46 = vsub.f32 %v5207_v24, %v5208_v21 }
0x137c   :  { %v5210_v8 = vand.u32 4294901760, %v5209_v46 }
0x137e   :  { %v7372_v58 = vpack.c.bf16 %v5217_v50, %v5210_v8 }
0x13d9   :  { %v4584_v37 = vpop.permute.xlu0 %4583 }
0x13da   :  { %v4586_v38 = vmul.f32 %v7595_v36, %v4584_v37 }
0x13dc   :  { %4588 = vrot.lane.b32.xlu1 %v4586_v38, %s7608_s11 }
0x144e   :  { %v4589_v49 = vpop.permute.xlu1 %4588 }
0x144f   :  { %v8537_v43 = vadd.f32 %v4589_v49, %v4581_v9 }
0x1451   :  { %7596 = vtanh.f32 %v8537_v43 }
0x145b   :  { %v7597_v19 = vpop.eup %7596 }
0x145c   :  { %4594 = vrot.lane.b32.xlu0 %v7597_v19, %s7607_s10 }
0x14ce   :  { %v4595_v3 = vpop.permute.xlu0 %4594 }
0x14cf   :  { %v4597_v4 = vmul.f32 %v7595_v36, %v4595_v3  ;;  %v7390_v36 = vpack.c.bf16 %v5215_v10, %v5208_v21 }
0x14d1   :  { %4599 = vrot.lane.b32.xlu1 %v4597_v4, %s7608_s11  ;;  %v43_v4 = vld [vmem:[%s8624_s1 + $0x100] sm:$0xff] }
0x1543   :  { %v4600_v56 = vpop.permute.xlu1 %4599 }
0x1544   :  { %v4601_v31 = vsel %vm994_vm1, %v4600_v56, 0 }
0x1545   :  { %v4672_v41 = vand.u32 4294901760, %v4601_v31 }
0x1547   :  { %v4673_v44 = vsub.f32 %v4601_v31, %v4672_v41 }
0x1549   :  { %v4674_v52 = vand.u32 4294901760, %v4673_v44 }
0x154b   :  { %v4675_v39 = vsub.f32 %v4673_v44, %v4674_v52 }
0x154d   :  { %v4676_v40 = vand.u32 4294901760, %v4675_v39 }
0x154f   :  { %6759 = vmatmul.mubr.f32.vlgmr.msra.gmra.mrb[12].mxu0 %v4676_v40 }
0x1550   :  { %7334 = vmatpush3.bf16.msra.mxu0 %v8108_v12  ;;  %6769 = vmatprep.mubr.msk.f32.mxu0 %vm7605_vm0, %v7606_v53 }
0x1551   :  { %7335 = vmatprep.subr.bf16.mxu0 %v8690_v29 }
0x1554   :  { %7337 = vmatpush3.bf16.msra.mxu0 %v8116_v7 }
0x1555   :  { %7338 = vmatprep.subr.bf16.mxu0 %v8690_v29 }
0x1557   :  { %6770 = vmatmul.mubr.f32.vlgmr.msra.gmra.mrb[12].mxu0 %v4672_v41 }
0x1558   :  { %7340 = vmatpush3.bf16.msra.mxu0 %v8028_v34  ;;  %6780 = vmatprep.mubr.msk.f32.mxu0 %vm7605_vm0, %v7606_v53  ;;  %v38_v34 = vld [vmem:[%s8624_s1 + $0xd8] sm:$0xff] }
0x1559   :  { %7341 = vmatprep.subr.bf16.mxu0 %v8690_v29 }
0x155c   :  { %7343 = vmatpush3.bf16.msra.mxu0 %v8038_v61  ;;  %v7404_v61 = vadd.f32 %v8238_v30, %v38_v34  ;;  %v39_v30 = vld [vmem:[%s8624_s1 + $0xe0] sm:$0xff] }
0x155d   :  { %7344 = vmatprep.subr.bf16.mxu0 %v8690_v29  ;;  %v5113_v18 = vand.u32 4294901760, %v39_v30 }
0x155f   :  { %6781 = vmatmul.mubr.f32.vlgmr.msra.gmra.mrb[12].mxu0 %v4673_v44  ;;  %v8584_v6 = vpack.c.bf16 %v5116_v5, %v5113_v18  ;;  %v5193_v23 = vsub.f32 %v39_v30, %v5113_v18 }
0x1560   :  { %7346 = vmatpush3.bf16.msra.mxu0 %v8046_v27  ;;  %6791 = vmatprep.mubr.msk.f32.mxu0 %vm7605_vm0, %v7606_v53 }
0x1561   :  { %7347 = vmatprep.subr.bf16.mxu0 %v8690_v29  ;;  %7364 = vmatpush3.bf16.msra.mxu1 %v8584_v6  ;;  %v5194_v47 = vand.u32 4294901760, %v5193_v23  ;;  %v7375_v25 = vpack.c.bf16 %v5200_v51, %v5193_v23 }
0x1562   :  { %7365 = vmatprep.subr.bf16.mxu1 %v8690_v29 }
0x1563   :  { %v5195_v2 = vsub.f32 %v5193_v23, %v5194_v47  ;;  %v7387_v33 = vpack.c.bf16 %v5201_v16, %v5194_v47 }
0x1564   :  { %7349 = vmatpush3.bf16.msra.mxu0 %v8051_v42 }
0x1565   :  { %7350 = vmatprep.subr.bf16.mxu0 %v8690_v29  ;;  %7367 = vmatpush3.bf16.msra.mxu1 %v7366_v35  ;;  %v5196_v57 = vand.u32 4294901760, %v5195_v2 }
0x1566   :  { %7368 = vmatprep.subr.bf16.mxu1 %v8690_v29 }
0x1567   :  { %6792 = vmatmul.mubr.f32.vlgmr.msra.gmra.mrb[12].mxu0 %v4674_v52  ;;  %v7369_v48 = vpack.c.bf16 %v5203_v17, %v5196_v57 }
0x1568   :  { %7352 = vmatpush3.bf16.msra.mxu0 %v8060_v45  ;;  %6802 = vmatprep.mubr.msk.f32.mxu0 %vm7605_vm0, %v7606_v53 }
0x1569   :  { %7353 = vmatprep.subr.bf16.mxu0 %v8690_v29 }
0x156c   :  { %7355 = vmatpush3.bf16.msra.mxu0 %v8069_v22 }
0x156d   :  { %7356 = vmatprep.subr.bf16.mxu0 %v8690_v29 }
0x156f   :  { %6803 = vmatmul.mubr.f32.vlgmr.msra.gmra.mrb[12].mxu0 %v4672_v41 }
0x1570   :  { %7358 = vmatpush3.bf16.msra.mxu0 %v8046_v27  ;;  %6813 = vmatprep.mubr.msk.f32.mxu0 %vm7605_vm0, %v7606_v53 }
0x1571   :  { %7359 = vmatprep.subr.bf16.mxu0 %v8690_v29 }
0x1574   :  { %7361 = vmatpush3.bf16.msra.mxu0 %v8051_v42 }
0x1577   :  { %6814 = vmatmul.mubr.f32.vlgmr.msra.gmra.mrb[12].mxu0 %v4672_v41 }
0x164a   :  { %v5084_v45 = vpop.f32.mrb[12].mxu0 }
0x164b   :  { %v5088_v22 = vadd.f32 %v7404_v61, %v5084_v45  ;;  %v6815_v12 = vpop.f32.mrb[13].mxu0 }
0x164d   :  { %7598 = vtanh.f32 %v5088_v22  ;;  %v5609_v27 = vmul.f32 -1.442695, %v5088_v22 }
0x164f   :  { %7600 = vpow2.f32 %v5609_v27 }
0x1657   :  { %v7599_v7 = vpop.eup %7598 }
0x1658   :  { %5098 = vrot.lane.b32.xlu0 %v7599_v7, %s7607_s10 }
0x1659   :  { %v7601_v20 = vpop.eup %7600 }
0x165a   :  { %v5092_v54 = vadd.f32 1.0, %v7601_v20 }
0x165c   :  { %7602 = vrcp.f32 %v5092_v54 }
0x1666   :  { %v7603_v42 = vpop.eup %7602 }
0x1667   :  { %v5096_v13 = vmul.f32 %v7603_v42, %v8537_v43 }
0x16ca   :  { %v5099_v55 = vpop.permute.xlu0 %5098 }
0x16cb   :  { %v5101_v63 = vmul.f32 %v7603_v42, %v5099_v55 }
0x16cd   :  { %5103 = vrot.lane.b32.xlu1 %v5101_v63, %s7608_s11 }
0x173f   :  { %v5104_v32 = vpop.permute.xlu1 %5103 }
0x1740   :  { %v5106_v0 = vadd.f32 %v5104_v32, %v5096_v13 }
0x1742   :  { %5108 = vrot.lane.b32.xlu0 %v5106_v0, %s7609_s5 }
0x17b4   :  { %v5109_v37 = vpop.permute.xlu0 %5108 }
0x17b5   :  { %v5110_v38 = vsel %vm994_vm1, %v5109_v37, 0 }
0x17b6   :  { %v5181_v9 = vand.u32 4294901760, %v5110_v38 }
0x17b8   :  { %v5182_v49 = vsub.f32 %v5110_v38, %v5181_v9 }
0x17ba   :  { %v5183_v43 = vand.u32 4294901760, %v5182_v49 }
0x17bc   :  { %v5184_v19 = vsub.f32 %v5182_v49, %v5183_v43 }
0x17be   :  { %v5185_v3 = vand.u32 4294901760, %v5184_v19 }
0x17c0   :  { %6825 = vmatmul.mubr.f32.vlgmr.msra.gmra.mrb[12].mxu1 %v5185_v3 }
0x17c1   :  { %7370 = vmatpush3.bf16.msra.mxu1 %v7369_v48  ;;  %6835 = vmatprep.mubr.msk.f32.mxu1 %vm7605_vm0, %v7606_v53 }
0x17c2   :  { %7371 = vmatprep.subr.bf16.mxu1 %v8690_v29 }
0x17c5   :  { %7373 = vmatpush3.bf16.msra.mxu1 %v7372_v58 }
0x17c6   :  { %7374 = vmatprep.subr.bf16.mxu1 %v8690_v29 }
0x17c8   :  { %6836 = vmatmul.mubr.f32.vlgmr.msra.gmra.mrb[12].mxu1 %v5181_v9 }
0x17c9   :  { %7376 = vmatpush3.bf16.msra.mxu1 %v7375_v25  ;;  %6846 = vmatprep.mubr.msk.f32.mxu1 %vm7605_vm0, %v7606_v53 }
0x17ca   :  { %7377 = vmatprep.subr.bf16.mxu1 %v8690_v29 }
0x17cd   :  { %7379 = vmatpush3.bf16.msra.mxu1 %v7378_v26 }
0x17ce   :  { %7380 = vmatprep.subr.bf16.mxu1 %v8690_v29 }
0x17d0   :  { %6847 = vmatmul.mubr.f32.vlgmr.msra.gmra.mrb[12].mxu1 %v5182_v49 }
0x17d1   :  { %7382 = vmatpush3.bf16.msra.mxu1 %v8584_v6  ;;  %6857 = vmatprep.mubr.msk.f32.mxu1 %vm7605_vm0, %v7606_v53 }
0x17d2   :  { %7383 = vmatprep.subr.bf16.mxu1 %v8690_v29 }
0x17d5   :  { %7385 = vmatpush3.bf16.msra.mxu1 %v7366_v35 }
0x17d6   :  { %7386 = vmatprep.subr.bf16.mxu1 %v8690_v29 }
0x17d8   :  { %6858 = vmatmul.mubr.f32.vlgmr.msra.gmra.mrb[12].mxu1 %v5183_v43 }
0x17d9   :  { %7388 = vmatpush3.bf16.msra.mxu1 %v7387_v33  ;;  %6868 = vmatprep.mubr.msk.f32.mxu1 %vm7605_vm0, %v7606_v53 }
0x17da   :  { %7389 = vmatprep.subr.bf16.mxu1 %v8690_v29 }
0x17dd   :  { %7391 = vmatpush3.bf16.msra.mxu1 %v7390_v36 }
0x17de   :  { %7392 = vmatprep.subr.bf16.mxu1 %v8690_v29 }
0x17e0   :  { %6869 = vmatmul.mubr.f32.vlgmr.msra.gmra.mrb[12].mxu1 %v5181_v9 }
0x17e1   :  { %7394 = vmatpush3.bf16.msra.mxu1 %v8584_v6  ;;  %6879 = vmatprep.mubr.msk.f32.mxu1 %vm7605_vm0, %v7606_v53 }
0x17e2   :  { %7395 = vmatprep.subr.bf16.mxu1 %v8690_v29 }
0x17e5   :  { %7397 = vmatpush3.bf16.msra.mxu1 %v7366_v35 }
0x17e8   :  { %6880 = vmatmul.mubr.f32.vlgmr.msra.gmra.mrb[12].mxu1 %v5181_v9 }
0x18bb   :  { %v5593_v56 = vpop.f32.mrb[12].mxu1 }
0x18bc   :  { %v7407_v31 = vadd.f32 %v5593_v56, %v43_v4  ;;  %v6881_v41 = vpop.f32.mrb[13].mxu1 }
0x18be   :  { %5597 = vst [vmem:[%s8626_s2] sm:$0xff] %v7407_v31 }

</bundles_post_ra>
